<compile_context>
chip_gen: v5e
topology: v5e:2x2
jax: 0.10.0
libtpu: 0.0.40
codegen_flags: <defaults>
</compile_context>

<pallas_src>
import functools

import jax
import jax.numpy as jnp
from jax.experimental import pallas as pl
from jax.experimental.pallas import tpu as pltpu

LEAKY_SLOPE = 0.01  # nn.LeakyReLU() default negative_slope
LANE = 128


def _round_up(n, m):
    return (n + m - 1) // m * m


def _cdiv(a, b):
    return (a + b - 1) // b


# ----------------------------------------------------------------------------
# Pallas kernel: full CVAE forward for one batch tile (6 MXU matmuls + elementwise)
# ----------------------------------------------------------------------------
def cvae_kernel(
    input_dim, latent_dim,
    xc_ref, c_ref, eps_ref,
    we1_ref, be1_ref,
    we2_ref, be2_ref,
    wml_ref, bml_ref,
    wd1_ref, bd1_ref,
    wd2_ref, bd2_ref,
    wd3_ref, bd3_ref,
    out_ref,
):
    wdtype = we1_ref.dtype  # bf16 weights, f32 accumulation

    def leaky(v):
        # max(v, a*v) == LeakyReLU(v) for 0 < a < 1 (mul+max, no cmp/select)
        return jnp.maximum(v, LEAKY_SLOPE * v)

    def mm(a, w_ref):
        return jnp.dot(a.astype(wdtype), w_ref[...],
                       preferred_element_type=jnp.float32)

    # ---- encoder: cat([x, c]) was done in the wrapper -> a single matmul ----
    h = leaky(mm(xc_ref[...], we1_ref) + be1_ref[...])
    h = leaky(mm(h, we2_ref) + be2_ref[...])

    # ---- fused mu/logvar head packed into the output slab at lane offset
    #      input_dim:  ml = [0..0 | mu | logvar | 0..0] ----
    ml = mm(h, wml_ref) + bml_ref[...]
    mu = ml[:, input_dim:input_dim + latent_dim]
    logvar = ml[:, input_dim + latent_dim:input_dim + 2 * latent_dim]

    # ---- reparameterize: z = mu + eps * exp(0.5 * logvar) (f32) ----
    z = mu + eps_ref[...] * jnp.exp(0.5 * logvar)

    # ---- decoder: single merged matmul on cat([z, c]) ----
    zc = jnp.concatenate([z.astype(wdtype), c_ref[...]], axis=-1)
    d = leaky(mm(zc, wd1_ref) + bd1_ref[...])
    d = leaky(mm(d, wd2_ref) + bd2_ref[...])
    xr = mm(d, wd3_ref) + bd3_ref[...]     # = [x_recon | 0..0] (slab-padded)

    # ---- fused lane-dense output: [x_recon | mu | logvar | 0-pad] ----
    # (the two slabs are zero in each other's lanes, so a single add fuses them)
    out_ref[...] = xr + ml


# ----------------------------------------------------------------------------
# Parameter packing for the kernel layout (done once, outside the hot path)
# ----------------------------------------------------------------------------
def pack_cvae_params(params, input_dim, output_dim, latent_dim,
                     weight_dtype=jnp.bfloat16):
    h0 = params["we1"].shape[1]
    h1 = params["we2"].shape[1]
    slab = _round_up(input_dim + 2 * latent_dim, LANE)

    p = {}
    # encoder (merged [x | c] input)
    p["we1"] = params["we1"].astype(weight_dtype)          # (in+out, h0)
    p["be1"] = params["be1"].astype(jnp.float32)
    p["we2"] = params["we2"].astype(weight_dtype)          # (h0, h1)
    p["be2"] = params["be2"].astype(jnp.float32)

    # fused mu/logvar head packed at lane offset input_dim of the output slab
    wml = jnp.zeros((h1, slab), jnp.float32)
    wml = wml.at[:, input_dim:input_dim + latent_dim].set(params["wmu"])
    wml = wml.at[:, input_dim + latent_dim:input_dim + 2 * latent_dim].set(params["wlv"])
    bml = jnp.zeros((1, slab), jnp.float32)
    bml = bml.at[:, input_dim:input_dim + latent_dim].set(params["bmu"])
    bml = bml.at[:, input_dim + latent_dim:input_dim + 2 * latent_dim].set(params["blv"])
    p["wml"] = wml.astype(weight_dtype)
    p["bml"] = bml

    # decoder (merged [z | c] input)
    p["wd1"] = params["wd1"].astype(weight_dtype)          # (latent+out, h1)
    p["bd1"] = params["bd1"].astype(jnp.float32)
    p["wd2"] = params["wd2"].astype(weight_dtype)          # (h1, h0)
    p["bd2"] = params["bd2"].astype(jnp.float32)

    # final decoder layer packed at lane offset 0 of the output slab
    wd3 = jnp.zeros((h0, slab), jnp.float32)
    wd3 = wd3.at[:, :input_dim].set(params["wd3"])
    bd3 = jnp.zeros((1, slab), jnp.float32)
    bd3 = bd3.at[:, :input_dim].set(params["bd3"])
    p["wd3"] = wd3.astype(weight_dtype)
    p["bd3"] = bd3
    return p


# ----------------------------------------------------------------------------
# Wrapper
# ----------------------------------------------------------------------------
@functools.partial(jax.jit, static_argnames=("block_batch",))
def cvae_forward(x, c, eps, packed, *, block_batch=1024):
    batch, input_dim = x.shape
    output_dim = c.shape[1]
    latent_dim = eps.shape[1]
    h0 = packed["we1"].shape[1]
    h1 = packed["we2"].shape[1]
    slab = packed["wd3"].shape[1]

    # --- batch tiling ---------------------------------------------------
    # tb multiple of 16 (bf16 sublane packing); even tile count (>=2) when the
    # batch allows so ("parallel",) shards tiles across both v7x TensorCores.
    tb_align = 16
    n_tiles = max(1, _cdiv(batch, block_batch))
    if batch >= 2 * tb_align and n_tiles % 2 == 1:
        n_tiles += 1
    tb = _round_up(_cdiv(batch, n_tiles), tb_align)
    padded = n_tiles * tb
    if padded != batch:
        pad = padded - batch
        x = jnp.pad(x, ((0, pad), (0, 0)))
        c = jnp.pad(c, ((0, pad), (0, 0)))
        eps = jnp.pad(eps, ((0, pad), (0, 0)))

    # encoder concat done here (free XLA concat on the HBM input); bf16 streams
    xc = jnp.concatenate([x, c], axis=1).astype(jnp.bfloat16)
    c_b = c.astype(jnp.bfloat16)
    # eps kept f32 so the reparameterize math stays f32

    def row_spec(feat):
        return pl.BlockSpec((tb, feat), lambda i: (i, 0))

    def resident(arr):  # full array, same block every step -> stays in VMEM
        return pl.BlockSpec(arr.shape, lambda i: (0, 0))

    args = (
        xc, c_b, eps,
        packed["we1"], packed["be1"],
        packed["we2"], packed["be2"],
        packed["wml"], packed["bml"],
        packed["wd1"], packed["bd1"],
        packed["wd2"], packed["bd2"],
        packed["wd3"], packed["bd3"],
    )
    in_specs = [
        row_spec(input_dim + output_dim), row_spec(output_dim), row_spec(latent_dim),
        resident(packed["we1"]), resident(packed["be1"]),
        resident(packed["we2"]), resident(packed["be2"]),
        resident(packed["wml"]), resident(packed["bml"]),
        resident(packed["wd1"]), resident(packed["bd1"]),
        resident(packed["wd2"]), resident(packed["bd2"]),
        resident(packed["wd3"]), resident(packed["bd3"]),
    ]

    flops = 2 * padded * (
        (input_dim + output_dim) * h0 + h0 * h1 + h1 * 2 * latent_dim
        + (latent_dim + output_dim) * h1 + h1 * h0 + h0 * input_dim
    )
    weight_bytes = sum(int(a.size) * a.dtype.itemsize for a in packed.values())
    bytes_accessed = (weight_bytes
                      + int(xc.size) * 2 + int(c_b.size) * 2 + int(eps.size) * 4
                      + padded * slab * 4)
    cost = pl.CostEstimate(flops=flops,
                           transcendentals=padded * latent_dim,
                           bytes_accessed=bytes_accessed)

    out = pl.pallas_call(
        functools.partial(cvae_kernel, input_dim, latent_dim),
        out_shape=jax.ShapeDtypeStruct((padded, slab), jnp.float32),
        grid=(n_tiles,),
        in_specs=in_specs,
        out_specs=row_spec(slab),
        compiler_params=pltpu.CompilerParams(
            dimension_semantics=("parallel",),       # megacore on v7x; no-op elsewhere
            vmem_limit_bytes=32 * 1024 * 1024),
        cost_estimate=cost,
    )(*args)

    x_recon = out[:batch, :input_dim]
    mu = out[:batch, input_dim:input_dim + latent_dim]
    logvar = out[:batch, input_dim + latent_dim:input_dim + 2 * latent_dim]
    return x_recon, mu, logvar


# ----------------------------------------------------------------------------
# Deterministic parameter init (PyTorch Linear-style uniform(-1/sqrt(in), +1/sqrt(in)))
# Weights stored transposed to (in, out); biases as (1, out).
# ----------------------------------------------------------------------------
def init_linear(key, in_dim, out_dim):
    kw, kb = jax.random.split(key)
    bound = 1.0 / jnp.sqrt(jnp.float32(in_dim))
    w = jax.random.uniform(kw, (in_dim, out_dim), jnp.float32, -bound, bound)
    b = jax.random.uniform(kb, (1, out_dim), jnp.float32, -bound, bound)
    return w, b


def init_cvae_params(key, input_dim, output_dim, latent_dim, hidden_layers):
    keys = jax.random.split(key, 7)
    params = {}
    params["we1"], params["be1"] = init_linear(keys[0], input_dim + output_dim, hidden_layers[0])
    params["we2"], params["be2"] = init_linear(keys[1], hidden_layers[0], hidden_layers[1])
    params["wmu"], params["bmu"] = init_linear(keys[2], hidden_layers[1], latent_dim)
    params["wlv"], params["blv"] = init_linear(keys[3], hidden_layers[1], latent_dim)
    params["wd1"], params["bd1"] = init_linear(keys[4], latent_dim + output_dim, hidden_layers[1])
    params["wd2"], params["bd2"] = init_linear(keys[5], hidden_layers[1], hidden_layers[0])
    params["wd3"], params["bd3"] = init_linear(keys[6], hidden_layers[0], input_dim)
    return params


# ----------------------------------------------------------------------------
# Pure-JAX reference using the same packed (bf16-weight / f32-accum) math.
# NOTE: bf16 weights mean results differ from an f32 PyTorch CVAE beyond ~1e-3;
# this check validates the kernel against identical-math JAX, not torch parity.
# ----------------------------------------------------------------------------
def cvae_reference(x, c, eps, packed, input_dim, latent_dim):
    def leaky(v):
        return jnp.maximum(v, LEAKY_SLOPE * v)

    def mm(a, w):
        return jnp.dot(a.astype(w.dtype), w, preferred_element_type=jnp.float32)

    xc = jnp.concatenate([x, c], axis=1)
    h = leaky(mm(xc, packed["we1"]) + packed["be1"])
    h = leaky(mm(h, packed["we2"]) + packed["be2"])
    ml = mm(h, packed["wml"]) + packed["bml"]
    mu = ml[:, input_dim:input_dim + latent_dim]
    logvar = ml[:, input_dim + latent_dim:input_dim + 2 * latent_dim]
    z = mu + eps * jnp.exp(0.5 * logvar)
    zc = jnp.concatenate([z, c], axis=1)
    d = leaky(mm(zc, packed["wd1"]) + packed["bd1"])
    d = leaky(mm(d, packed["wd2"]) + packed["bd2"])
    x_recon = (mm(d, packed["wd3"]) + packed["bd3"])[:, :input_dim]
    return x_recon, mu, logvar


if __name__ == "__main__":
    # Small shapes consistent with the module (hidden_layers = [256, 512] per spec).
    batch = 48
    input_dim = 32     # x features (physics observables)
    output_dim = 32    # conditioning features c
    latent_dim = 16
    hidden_layers = [256, 512]

    key = jax.random.PRNGKey(0)
    k_params, k_x, k_c, k_eps = jax.random.split(key, 4)

    params = init_cvae_params(k_params, input_dim, output_dim, latent_dim, hidden_layers)
    packed = pack_cvae_params(params, input_dim, output_dim, latent_dim)

    x = jax.random.normal(k_x, (batch, input_dim), jnp.float32)
    c = jax.random.normal(k_c, (batch, output_dim), jnp.float32)
    # TODO(synk): eps is sampled outside the kernel (matches torch.randn_like
    # semantics with an externally fixed RNG); pltpu.prng_seed +
    # pltpu.stateful_normal could move it in-kernel if bit-parity is not required.
    eps = jax.random.normal(k_eps, (batch, latent_dim), jnp.float32)

    x_recon, mu, logvar = cvae_forward(x, c, eps, packed)
    jax.block_until_ready((x_recon, mu, logvar))

    # sanity check vs pure-JAX reference using the identical bf16-weight math
    xr_ref, mu_ref, lv_ref = cvae_reference(x, c, eps, packed, input_dim, latent_dim)
    assert x_recon.shape == (batch, input_dim)
    assert mu.shape == (batch, latent_dim) and logvar.shape == (batch, latent_dim)
    assert jnp.allclose(x_recon, xr_ref, atol=2e-3, rtol=2e-3)
    assert jnp.allclose(mu, mu_ref, atol=2e-3, rtol=2e-3)
    assert jnp.allclose(logvar, lv_ref, atol=2e-3, rtol=2e-3)

    print("KERNEL_OK")
</pallas_src>

<mosaic_0001>
module attributes {stable_mosaic.version = 11 : i64} {
  func.func @cvae_kernel(%arg0: i32, %arg1: memref<32x64xbf16, #tpu.memory_space<vmem>>, %arg2: memref<32x32xbf16, #tpu.memory_space<vmem>>, %arg3: memref<32x16xf32, #tpu.memory_space<vmem>>, %arg4: memref<64x256xbf16, #tpu.memory_space<vmem>>, %arg5: memref<1x256xf32, #tpu.memory_space<vmem>>, %arg6: memref<256x512xbf16, #tpu.memory_space<vmem>>, %arg7: memref<1x512xf32, #tpu.memory_space<vmem>>, %arg8: memref<512x128xbf16, #tpu.memory_space<vmem>>, %arg9: memref<1x128xf32, #tpu.memory_space<vmem>>, %arg10: memref<48x512xbf16, #tpu.memory_space<vmem>>, %arg11: memref<1x512xf32, #tpu.memory_space<vmem>>, %arg12: memref<512x256xbf16, #tpu.memory_space<vmem>>, %arg13: memref<1x256xf32, #tpu.memory_space<vmem>>, %arg14: memref<256x128xbf16, #tpu.memory_space<vmem>>, %arg15: memref<1x128xf32, #tpu.memory_space<vmem>>, %arg16: memref<32x128xf32, #tpu.memory_space<vmem>>) attributes {dimension_semantics = [#tpu.dimension_semantics<parallel>], iteration_bounds = array<i64: 2>, scalar_prefetch = 0 : i64, scratch_operands = 0 : i64, tpu.core_type = #tpu.core_type<tc>, window_params = [{transform_indices = @transform_0, window_bounds = array<i64: 32, 64>}, {transform_indices = @transform_1, window_bounds = array<i64: 32, 32>}, {transform_indices = @transform_2, window_bounds = array<i64: 32, 16>}, {pipeline_mode = #tpu.pipeline_mode<synchronous>, transform_indices = @transform_3, window_bounds = array<i64: 64, 256>}, {pipeline_mode = #tpu.pipeline_mode<synchronous>, transform_indices = @transform_4, window_bounds = array<i64: 1, 256>}, {pipeline_mode = #tpu.pipeline_mode<synchronous>, transform_indices = @transform_5, window_bounds = array<i64: 256, 512>}, {pipeline_mode = #tpu.pipeline_mode<synchronous>, transform_indices = @transform_6, window_bounds = array<i64: 1, 512>}, {pipeline_mode = #tpu.pipeline_mode<synchronous>, transform_indices = @transform_7, window_bounds = array<i64: 512, 128>}, {pipeline_mode = #tpu.pipeline_mode<synchronous>, transform_indices = @transform_8, window_bounds = array<i64: 1, 128>}, {pipeline_mode = #tpu.pipeline_mode<synchronous>, transform_indices = @transform_9, window_bounds = array<i64: 48, 512>}, {pipeline_mode = #tpu.pipeline_mode<synchronous>, transform_indices = @transform_10, window_bounds = array<i64: 1, 512>}, {pipeline_mode = #tpu.pipeline_mode<synchronous>, transform_indices = @transform_11, window_bounds = array<i64: 512, 256>}, {pipeline_mode = #tpu.pipeline_mode<synchronous>, transform_indices = @transform_12, window_bounds = array<i64: 1, 256>}, {pipeline_mode = #tpu.pipeline_mode<synchronous>, transform_indices = @transform_13, window_bounds = array<i64: 256, 128>}, {pipeline_mode = #tpu.pipeline_mode<synchronous>, transform_indices = @transform_14, window_bounds = array<i64: 1, 128>}, {transform_indices = @transform_15, window_bounds = array<i64: 32, 128>}]} {
    %c0 = arith.constant 0 : index
    %c0_0 = arith.constant 0 : index
    %0 = vector.load %arg1[%c0, %c0_0] : memref<32x64xbf16, #tpu.memory_space<vmem>>, vector<32x64xbf16>
    %c0_1 = arith.constant 0 : index
    %c0_2 = arith.constant 0 : index
    %1 = vector.load %arg4[%c0_1, %c0_2] : memref<64x256xbf16, #tpu.memory_space<vmem>>, vector<64x256xbf16>
    %cst = arith.constant dense<0.000000e+00> : vector<32x256xf32>
    %2 = tpu.matmul %0, %1, %cst {dimension_numbers = #tpu.dot_dimension_numbers<[1], [0], [0], [1], [0, 0, 1, 1], [], []>} : vector<32x64xbf16>, vector<64x256xbf16>, vector<32x256xf32> -> vector<32x256xf32>
    %c0_3 = arith.constant 0 : index
    %c0_4 = arith.constant 0 : index
    %3 = vector.load %arg5[%c0_3, %c0_4] : memref<1x256xf32, #tpu.memory_space<vmem>>, vector<1x256xf32>
    %4 = vector.broadcast %3 : vector<1x256xf32> to vector<32x256xf32>
    %5 = arith.addf %2, %4 : vector<32x256xf32>
    %cst_5 = arith.constant 0.00999999977 : f32
    %6 = vector.broadcast %cst_5 : f32 to vector<32x256xf32>
    %7 = arith.mulf %6, %5 : vector<32x256xf32>
    %8 = arith.maximumf %5, %7 : vector<32x256xf32>
    %9 = arith.truncf %8 : vector<32x256xf32> to vector<32x256xbf16>
    %c0_6 = arith.constant 0 : index
    %c0_7 = arith.constant 0 : index
    %10 = vector.load %arg6[%c0_6, %c0_7] : memref<256x512xbf16, #tpu.memory_space<vmem>>, vector<256x512xbf16>
    %cst_8 = arith.constant dense<0.000000e+00> : vector<32x512xf32>
    %11 = tpu.matmul %9, %10, %cst_8 {dimension_numbers = #tpu.dot_dimension_numbers<[1], [0], [0], [1], [0, 0, 1, 1], [], []>} : vector<32x256xbf16>, vector<256x512xbf16>, vector<32x512xf32> -> vector<32x512xf32>
    %c0_9 = arith.constant 0 : index
    %c0_10 = arith.constant 0 : index
    %12 = vector.load %arg7[%c0_9, %c0_10] : memref<1x512xf32, #tpu.memory_space<vmem>>, vector<1x512xf32>
    %13 = vector.broadcast %12 : vector<1x512xf32> to vector<32x512xf32>
    %14 = arith.addf %11, %13 : vector<32x512xf32>
    %cst_11 = arith.constant 0.00999999977 : f32
    %15 = vector.broadcast %cst_11 : f32 to vector<32x512xf32>
    %16 = arith.mulf %15, %14 : vector<32x512xf32>
    %17 = arith.maximumf %14, %16 : vector<32x512xf32>
    %18 = arith.truncf %17 : vector<32x512xf32> to vector<32x512xbf16>
    %c0_12 = arith.constant 0 : index
    %c0_13 = arith.constant 0 : index
    %19 = vector.load %arg8[%c0_12, %c0_13] : memref<512x128xbf16, #tpu.memory_space<vmem>>, vector<512x128xbf16>
    %cst_14 = arith.constant dense<0.000000e+00> : vector<32x128xf32>
    %20 = tpu.matmul %18, %19, %cst_14 {dimension_numbers = #tpu.dot_dimension_numbers<[1], [0], [0], [1], [0, 0, 1, 1], [], []>} : vector<32x512xbf16>, vector<512x128xbf16>, vector<32x128xf32> -> vector<32x128xf32>
    %c0_15 = arith.constant 0 : index
    %c0_16 = arith.constant 0 : index
    %21 = vector.load %arg9[%c0_15, %c0_16] : memref<1x128xf32, #tpu.memory_space<vmem>>, vector<1x128xf32>
    %22 = vector.broadcast %21 : vector<1x128xf32> to vector<32x128xf32>
    %23 = arith.addf %20, %22 : vector<32x128xf32>
    %24 = vector.extract_strided_slice %23 {offsets = [0, 32], sizes = [32, 16], strides = [1, 1]} : vector<32x128xf32> to vector<32x16xf32>
    %25 = vector.extract_strided_slice %23 {offsets = [0, 48], sizes = [32, 16], strides = [1, 1]} : vector<32x128xf32> to vector<32x16xf32>
    %c0_17 = arith.constant 0 : index
    %c0_18 = arith.constant 0 : index
    %26 = vector.load %arg3[%c0_17, %c0_18] : memref<32x16xf32, #tpu.memory_space<vmem>>, vector<32x16xf32>
    %cst_19 = arith.constant 5.000000e-01 : f32
    %27 = vector.broadcast %cst_19 : f32 to vector<32x16xf32>
    %28 = arith.mulf %27, %25 : vector<32x16xf32>
    %29 = math.exp %28 : vector<32x16xf32>
    %30 = arith.mulf %26, %29 : vector<32x16xf32>
    %31 = arith.addf %24, %30 : vector<32x16xf32>
    %32 = arith.truncf %31 : vector<32x16xf32> to vector<32x16xbf16>
    %c0_20 = arith.constant 0 : index
    %c0_21 = arith.constant 0 : index
    %33 = vector.load %arg2[%c0_20, %c0_21] : memref<32x32xbf16, #tpu.memory_space<vmem>>, vector<32x32xbf16>
    %34 = tpu.concatenate %32, %33 in 1 : vector<32x16xbf16>, vector<32x32xbf16> -> vector<32x48xbf16>
    %c0_22 = arith.constant 0 : index
    %c0_23 = arith.constant 0 : index
    %35 = vector.load %arg10[%c0_22, %c0_23] : memref<48x512xbf16, #tpu.memory_space<vmem>>, vector<48x512xbf16>
    %cst_24 = arith.constant dense<0.000000e+00> : vector<32x512xf32>
    %36 = tpu.matmul %34, %35, %cst_24 {dimension_numbers = #tpu.dot_dimension_numbers<[1], [0], [0], [1], [0, 0, 1, 1], [], []>} : vector<32x48xbf16>, vector<48x512xbf16>, vector<32x512xf32> -> vector<32x512xf32>
    %c0_25 = arith.constant 0 : index
    %c0_26 = arith.constant 0 : index
    %37 = vector.load %arg11[%c0_25, %c0_26] : memref<1x512xf32, #tpu.memory_space<vmem>>, vector<1x512xf32>
    %38 = vector.broadcast %37 : vector<1x512xf32> to vector<32x512xf32>
    %39 = arith.addf %36, %38 : vector<32x512xf32>
    %cst_27 = arith.constant 0.00999999977 : f32
    %40 = vector.broadcast %cst_27 : f32 to vector<32x512xf32>
    %41 = arith.mulf %40, %39 : vector<32x512xf32>
    %42 = arith.maximumf %39, %41 : vector<32x512xf32>
    %43 = arith.truncf %42 : vector<32x512xf32> to vector<32x512xbf16>
    %c0_28 = arith.constant 0 : index
    %c0_29 = arith.constant 0 : index
    %44 = vector.load %arg12[%c0_28, %c0_29] : memref<512x256xbf16, #tpu.memory_space<vmem>>, vector<512x256xbf16>
    %cst_30 = arith.constant dense<0.000000e+00> : vector<32x256xf32>
    %45 = tpu.matmul %43, %44, %cst_30 {dimension_numbers = #tpu.dot_dimension_numbers<[1], [0], [0], [1], [0, 0, 1, 1], [], []>} : vector<32x512xbf16>, vector<512x256xbf16>, vector<32x256xf32> -> vector<32x256xf32>
    %c0_31 = arith.constant 0 : index
    %c0_32 = arith.constant 0 : index
    %46 = vector.load %arg13[%c0_31, %c0_32] : memref<1x256xf32, #tpu.memory_space<vmem>>, vector<1x256xf32>
    %47 = vector.broadcast %46 : vector<1x256xf32> to vector<32x256xf32>
    %48 = arith.addf %45, %47 : vector<32x256xf32>
    %cst_33 = arith.constant 0.00999999977 : f32
    %49 = vector.broadcast %cst_33 : f32 to vector<32x256xf32>
    %50 = arith.mulf %49, %48 : vector<32x256xf32>
    %51 = arith.maximumf %48, %50 : vector<32x256xf32>
    %52 = arith.truncf %51 : vector<32x256xf32> to vector<32x256xbf16>
    %c0_34 = arith.constant 0 : index
    %c0_35 = arith.constant 0 : index
    %53 = vector.load %arg14[%c0_34, %c0_35] : memref<256x128xbf16, #tpu.memory_space<vmem>>, vector<256x128xbf16>
    %cst_36 = arith.constant dense<0.000000e+00> : vector<32x128xf32>
    %54 = tpu.matmul %52, %53, %cst_36 {dimension_numbers = #tpu.dot_dimension_numbers<[1], [0], [0], [1], [0, 0, 1, 1], [], []>} : vector<32x256xbf16>, vector<256x128xbf16>, vector<32x128xf32> -> vector<32x128xf32>
    %c0_37 = arith.constant 0 : index
    %c0_38 = arith.constant 0 : index
    %55 = vector.load %arg15[%c0_37, %c0_38] : memref<1x128xf32, #tpu.memory_space<vmem>>, vector<1x128xf32>
    %56 = vector.broadcast %55 : vector<1x128xf32> to vector<32x128xf32>
    %57 = arith.addf %54, %56 : vector<32x128xf32>
    %58 = arith.addf %57, %23 : vector<32x128xf32>
    %c0_39 = arith.constant 0 : index
    %c0_40 = arith.constant 0 : index
    %59 = vector.load %arg16[%c0_39, %c0_40] : memref<32x128xf32, #tpu.memory_space<vmem>>, vector<32x128xf32>
    tpu.vector_store %arg16[%c0_39, %c0_40], %58 {strides = array<i32>} : memref<32x128xf32, #tpu.memory_space<vmem>>, vector<32x128xf32>,
    return
  }
  func.func @transform_0(%arg0: i32) -> (i32, i32) {
    %c0_i32 = arith.constant 0 : i32
    %c0_i32_0 = arith.constant 0 : i32
    return %arg0, %c0_i32 : i32, i32
  }
  func.func @transform_1(%arg0: i32) -> (i32, i32) {
    %c0_i32 = arith.constant 0 : i32
    %c0_i32_0 = arith.constant 0 : i32
    return %arg0, %c0_i32 : i32, i32
  }
  func.func @transform_2(%arg0: i32) -> (i32, i32) {
    %c0_i32 = arith.constant 0 : i32
    %c0_i32_0 = arith.constant 0 : i32
    return %arg0, %c0_i32 : i32, i32
  }
  func.func @transform_3(%arg0: i32) -> (i32, i32) {
    %c0_i32 = arith.constant 0 : i32
    %c0_i32_0 = arith.constant 0 : i32
    %c0_i32_1 = arith.constant 0 : i32
    return %c0_i32, %c0_i32_0 : i32, i32
  }
  func.func @transform_4(%arg0: i32) -> (i32, i32) {
    %c0_i32 = arith.constant 0 : i32
    %c0_i32_0 = arith.constant 0 : i32
    %c0_i32_1 = arith.constant 0 : i32
    return %c0_i32, %c0_i32_0 : i32, i32
  }
  func.func @transform_5(%arg0: i32) -> (i32, i32) {
    %c0_i32 = arith.constant 0 : i32
    %c0_i32_0 = arith.constant 0 : i32
    %c0_i32_1 = arith.constant 0 : i32
    return %c0_i32, %c0_i32_0 : i32, i32
  }
  func.func @transform_6(%arg0: i32) -> (i32, i32) {
    %c0_i32 = arith.constant 0 : i32
    %c0_i32_0 = arith.constant 0 : i32
    %c0_i32_1 = arith.constant 0 : i32
    return %c0_i32, %c0_i32_0 : i32, i32
  }
  func.func @transform_7(%arg0: i32) -> (i32, i32) {
    %c0_i32 = arith.constant 0 : i32
    %c0_i32_0 = arith.constant 0 : i32
    %c0_i32_1 = arith.constant 0 : i32
    return %c0_i32, %c0_i32_0 : i32, i32
  }
  func.func @transform_8(%arg0: i32) -> (i32, i32) {
    %c0_i32 = arith.constant 0 : i32
    %c0_i32_0 = arith.constant 0 : i32
    %c0_i32_1 = arith.constant 0 : i32
    return %c0_i32, %c0_i32_0 : i32, i32
  }
  func.func @transform_9(%arg0: i32) -> (i32, i32) {
    %c0_i32 = arith.constant 0 : i32
    %c0_i32_0 = arith.constant 0 : i32
    %c0_i32_1 = arith.constant 0 : i32
    return %c0_i32, %c0_i32_0 : i32, i32
  }
  func.func @transform_10(%arg0: i32) -> (i32, i32) {
    %c0_i32 = arith.constant 0 : i32
    %c0_i32_0 = arith.constant 0 : i32
    %c0_i32_1 = arith.constant 0 : i32
    return %c0_i32, %c0_i32_0 : i32, i32
  }
  func.func @transform_11(%arg0: i32) -> (i32, i32) {
    %c0_i32 = arith.constant 0 : i32
    %c0_i32_0 = arith.constant 0 : i32
    %c0_i32_1 = arith.constant 0 : i32
    return %c0_i32, %c0_i32_0 : i32, i32
  }
  func.func @transform_12(%arg0: i32) -> (i32, i32) {
    %c0_i32 = arith.constant 0 : i32
    %c0_i32_0 = arith.constant 0 : i32
    %c0_i32_1 = arith.constant 0 : i32
    return %c0_i32, %c0_i32_0 : i32, i32
  }
  func.func @transform_13(%arg0: i32) -> (i32, i32) {
    %c0_i32 = arith.constant 0 : i32
    %c0_i32_0 = arith.constant 0 : i32
    %c0_i32_1 = arith.constant 0 : i32
    return %c0_i32, %c0_i32_0 : i32, i32
  }
  func.func @transform_14(%arg0: i32) -> (i32, i32) {
    %c0_i32 = arith.constant 0 : i32
    %c0_i32_0 = arith.constant 0 : i32
    %c0_i32_1 = arith.constant 0 : i32
    return %c0_i32, %c0_i32_0 : i32, i32
  }
  func.func @transform_15(%arg0: i32) -> (i32, i32) {
    %c0_i32 = arith.constant 0 : i32
    %c0_i32_0 = arith.constant 0 : i32
    return %arg0, %c0_i32 : i32, i32
  }
}

</mosaic_0001>

<bundles_post_ra>
// kernel: cvae_forward.1
= control target key start
LH: loop header
LB: loop body
LE: loop exit
PB: predicated region body
PF: predicated region fallthrough
CT: control target
= control target key end

     0   :  { %s4704_s0 = inlined_call_operand.vmem [shape: bf16[64,64], index: 0, kind: input, shape index: {}]   ;;  %s4705_s1 = inlined_call_operand.vmem [shape: bf16[64,32], index: 1, kind: input, shape index: {}]   ;;  %s4706_s2 = inlined_call_operand.vmem [shape: f32[64,16], index: 2, kind: input, shape index: {}]   ;;  %s4707_s3 = inlined_call_operand.vmem [shape: bf16[64,256], index: 3, kind: input, shape index: {}]   ;;  %s4708_s4 = inlined_call_operand.hbm [shape: f32[1,256], index: 4, kind: input, shape index: {}]   ;;  %s4709_s5 = inlined_call_operand.hbm [shape: bf16[256,512], index: 5, kind: input, shape index: {}]   ;;  %s4710_s6 = inlined_call_operand.vmem [shape: f32[1,512], index: 6, kind: input, shape index: {}]   ;;  %s4711_s7 = inlined_call_operand.vmem [shape: bf16[512,128], index: 7, kind: input, shape index: {}]   ;;  %s4712_s8 = inlined_call_operand.hbm [shape: f32[1,128], index: 8, kind: input, shape index: {}]   ;;  %s4713_s9 = inlined_call_operand.hbm [shape: bf16[48,512], index: 9, kind: input, shape index: {}]   ;;  %s4714_s10 = inlined_call_operand.vmem [shape: f32[1,512], index: 10, kind: input, shape index: {}]   ;;  %s4715_s11 = inlined_call_operand.hbm [shape: bf16[512,256], index: 11, kind: input, shape index: {}]   ;;  %s4716_s12 = inlined_call_operand.vmem [shape: f32[1,256], index: 12, kind: input, shape index: {}]   ;;  %s4717_s13 = inlined_call_operand.vmem [shape: bf16[256,128], index: 13, kind: input, shape index: {}]   ;;  %s4718_s14 = inlined_call_operand.hbm [shape: f32[1,128], index: 14, kind: input, shape index: {}]   ;;  %s4719_s15 = inlined_call_operand.vmem [shape: f32[64,128], index: 15, kind: output, shape index: {}]  }
   0x1   :  { %4721 = sst [smem:[#allocation16_spill]] %s4708_s4 }
   0x2   :  { %4722 = sst [smem:[#allocation17_spill]] %s4709_s5 }
   0x3   :  { %4723 = sst [smem:[#allocation18_spill]] %s4713_s9 }
   0x4   :  { %4724 = sst [smem:[#allocation19_spill]] %s4716_s12 }
   0x5   :  { %4725 = sst [smem:[#allocation20_spill]] %s4719_s15 }
   0x6   :  { %20 = vsyncpa [#allocation3], 0 }
   0x7   :  { %21 = vsyncpa [#allocation5], 0 }
   0x8   :  { %22 = vsyncpa [#allocation8], 0 }
   0x9   :  { %23 = vsyncpa [#allocation11], 0  ;;  %s4298_s18 = smov 0  }
   0xa LB: > { %s4726_s5 = sld [smem:[#allocation17_spill]]  ;;  %s4720_s22 = sadd.s32 4294967295, %s4202_s18   ;;  %s4202_s18 = sphi %s4298_s18, %s29_s18  }
   0xb   : > { %p2876_p0 = scmp.ge.s32.totalorder %s4202_s18, 1  ;;  %p390_p1 = scmp.lt.s32.totalorder %s4202_s18, 3 }
   0xc   : > { %p4311_p2 = scmp.eq.s32.totalorder %s4720_s22, 0  ;;  %s4204_s25 = smov [#allocation4]  }
   0xd   : > { %p4315_p3 = pnand %p2876_p0, %p390_p1  ;;  %s418_s26 = sshll.u32 %s4204_s25, 4  ;;  %s419_s26 = int_to_ptr.vmem [resolvable:$true] %s418_s26 }
   0xe   : > { %s4729_s9 = sld [smem:[#allocation18_spill]]  ;;  %s4205_s16 = smov [#allocation7]  }
   0xf   : > { %p3937_p4 = pneg %p4315_p3  ;;  %s450_s17 = sshll.u32 %s4205_s16, 4  ;;  %s451_s17 = int_to_ptr.vmem [resolvable:$true] %s450_s17 }
  0x10   : > { %s416_s21 = sshll.u32 %s4726_s5, 4  ;;  %s4731_s4 = sld [smem:[#allocation16_spill]]  ;;  %s417_s21 = int_to_ptr.hbm [resolvable:$true] %s416_s21 }
  0x11   : > { %p4326_p5 = pnand %p4311_p2, %p3937_p4  ;;  %s4206_s22 = smov 256  }
  0x12   : > { %s4207_s27 = smov 16   ;;  %s4208_s28 = smov [#allocation2]  }
  0x13   : > { %3943 = dma.hbm_to_vmem [thread:$0]  (!%p4326_p5), %s417_s21, 8192, %s419_s26, [#allocation5], %s4206_s22, %s4206_s22, %s4207_s27  }
  0x14   : > { %s448_s29 = sshll.u32 %s4729_s9, 4  ;;  %s407_s5 = sshll.u32 %s4208_s28, 4  ;;  %s449_s29 = int_to_ptr.hbm [resolvable:$true] %s448_s29  ;;  %s408_s5 = int_to_ptr.vmem [resolvable:$true] %s407_s5 }
  0x15   : > { %3949 = dma.hbm_to_vmem [thread:$0]  (!%p4326_p5), %s449_s29, 1536, %s451_s17, [#allocation8], %s4206_s22, %s4206_s22, %s4207_s27  }
  0x16   : > { %s405_s25 = sshll.u32 %s4731_s4, 4  ;;  %s437_s16 = sshll.u32 %s4712_s8, 4  ;;  %s406_s25 = int_to_ptr.hbm [resolvable:$true] %s405_s25  ;;  %s438_s16 = int_to_ptr.hbm [resolvable:$true] %s437_s16 }
  0x17   : > { %3940 = dma.hbm_to_vmem [thread:$0]  (!%p4326_p5), %s406_s25, 32, %s408_s5, [#allocation3]  }
  0x18   : > { %s465_s4 = sshll.u32 %s4715_s11, 4  ;;  %s4209_s12 = smov [#allocation6]   ;;  %s466_s4 = int_to_ptr.hbm [resolvable:$true] %s465_s4 }
  0x19   : > { %s439_s21 = sshll.u32 %s4209_s12, 4  ;;  %s4210_s22 = smov [#allocation9]   ;;  %s440_s21 = int_to_ptr.vmem [resolvable:$true] %s439_s21 }
  0x1a   : > { %3946 = dma.hbm_to_vmem [thread:$0]  (!%p4326_p5), %s438_s16, 16, %s440_s21, [#allocation5]  }
  0x1b   : > { %s467_s26 = sshll.u32 %s4210_s22, 4  ;;  %s4211_s9 = smov 128   ;;  %s468_s26 = int_to_ptr.vmem [resolvable:$true] %s467_s26 }
  0x1c   : > { %s4212_s15 = smov 8   ;;  %s486_s17 = sshll.u32 %s4718_s14, 4  ;;  %s487_s17 = int_to_ptr.hbm [resolvable:$true] %s486_s17 }
  0x1d   : > { %3952 = dma.hbm_to_vmem [thread:$0]  (!%p4326_p5), %s466_s4, 8192, %s468_s26, [#allocation8], %s4211_s9, %s4211_s9, %s4212_s15  }
  0x1e   : > { %s4213_s25 = smov [#allocation10]   ;;  %528 = sbr.rel (%p4315_p3) target bundleno = 1385 (0x569), region = 80 }
  0x1f   : > { %s488_s27 = sshll.u32 %s4213_s25, 4  ;;  %s489_s27 = int_to_ptr.vmem [resolvable:$true] %s488_s27 }
  0x20   : > { %3955 = dma.hbm_to_vmem [thread:$0]  (!%p4326_p5), %s487_s17, 16, %s489_s27, [#allocation11]  }
  0x23   : > { %4185 = dma.done.wait (%p4311_p2), [#allocation3], 32  }
  0x24   : > { %4187 = vsyncadd (%p4311_p2), [#allocation3], 4294967264 }
  0x25   : > { %4189 = dma.done.wait (%p4311_p2), [#allocation5], 8208  }
  0x26   : > { %4191 = vsyncadd (%p4311_p2), [#allocation5], 4294959088 }
  0x27   : > { %4193 = dma.done.wait (%p4311_p2), [#allocation8], 9728  }
  0x28   : > { %4195 = vsyncadd (%p4311_p2), [#allocation8], 4294957568 }
  0x29   : > { %4197 = dma.done.wait (%p4311_p2), [#allocation11], 16  }
  0x2a   : > { %4199 = vsyncadd (%p4311_p2), [#allocation11], 4294967280  ;;  %s4732_s4 = sadd.s32 4294967295, %s4202_s18   ;;  %v2933_v0 = vld [vmem:[%s4707_s3 + $0x30] sm:$0xf]  ;;  %vm705_vm0 = vcmask 523264  }
  0x2b   : > { %s2891_s12 = sshll.u32 %s4732_s4, 2  ;;  %v3722_v1 = vld [vmem:[%s4707_s3 + $0x34] sm:$0xf0]  ;;  %v3721_v2 = vld [vmem:[%s4707_s3 + $0x34] sm:$0xf]  ;;  %s4214_s27 = smov 80  }
  0x2c   : > { %p613_p6 = scmp.lt.s32.totalorder %s2891_s12, 7  ;;  %v2934_v3 = vor.u32 %v3722_v1, %v2933_v0  ;;  %v2935_v4 = vld [vmem:[%s4707_s3 + $0x38] sm:$0xf0]  ;;  %v2925_v5 = vld [vmem:[%s4707_s3 + $0x20] sm:$0xf]  ;;  %s4215_s16 = smov 32  }
  0x2d   : > { %v3720_v6 = vld [vmem:[%s4707_s3 + $0x24] sm:$0xf0]  ;;  %v2938_v7 = vor.u32 %v3721_v2, %v2935_v4  ;;  %v3719_v8 = vld [vmem:[%s4707_s3 + $0x24] sm:$0xf]  ;;  %v2927_v9 = vld [vmem:[%s4707_s3 + $0x28] sm:$0xf0] }
  0x2e   : > { %s4736_s12 = smov (!%p613_p6, %s2891_s12), 7  ;;  %716 = vmatpush.bf16.msra.mxu0 %v2934_v3  ;;  %v2926_v10 = vor.u32 %v3720_v6, %v2925_v5  ;;  %v2930_v11 = vor.u32 %v3719_v8, %v2927_v9  ;;  %v2917_v12 = vld [vmem:[%s4707_s3 + $0x10] sm:$0xf]  ;;  %v3718_v13 = vld [vmem:[%s4707_s3 + $0x14] sm:$0xf0]  ;;  %s4216_s22 = smov 16  }
  0x2f   : > { %735 = vmatpush.bf16.msra.mxu1 %v2938_v7  ;;  %v3717_v14 = vld [vmem:[%s4707_s3 + $0x14] sm:$0xf]  ;;  %v2919_v15 = vld [vmem:[%s4707_s3 + $0x18] sm:$0xf0]  ;;  %s2892_s23 = sshll.u32 %s4736_s12, 2  ;;  %v2918_v21 = vor.u32 %v3718_v13, %v2917_v12  ;;  %s4217_s26 = smov 96  }
  0x30   : > { %v2909_v16 = vld [vmem:[%s4707_s3] sm:$0xf]  ;;  %v3716_v17 = vld [vmem:[%s4707_s3 + $0x4] sm:$0xf0]  ;;  %v3753_v19 = vld [vmem:[#allocation4 + $0xec] sm:$0xf0]  ;;  %v2922_v26 = vor.u32 %v3717_v14, %v2919_v15  ;;  %s4430_s4 = scalar_lea.vmem %s4704_s0, %s2892_s23  ;;  %s622_s21 = scalar_lea.vmem %s4705_s1, %s2892_s23 }
  0x31   : > { %v3057_v18 = vld [vmem:[#allocation4 + $0xe0] sm:$0xf]  ;;  %v2911_v23 = vld [vmem:[%s4707_s3 + $0x8] sm:$0xf0]  ;;  %v3785_v25 = vld [vmem:[#allocation4 + $0x1ec] sm:$0xf0]  ;;  %v2910_v38 = vor.u32 %v3716_v17, %v2909_v16 }
  0x32   : > { %v3185_v20 = vld [vmem:[#allocation4 + $0x1e0] sm:$0xf]  ;;  %717 = vmatpush.bf16.msra.mxu0 %v2926_v10  ;;  %v3058_v24 = vor.u32 %v3753_v19, %v3057_v18  ;;  %v3751_v28 = vld [vmem:[#allocation4 + $0xe4] sm:$0xf]  ;;  %v3059_v29 = vld [vmem:[#allocation4 + $0xf0] sm:$0xf0] }
  0x33   : > { %v3715_v22 = vld [vmem:[%s4707_s3 + $0x4] sm:$0xf]  ;;  %736 = vmatpush.bf16.msra.mxu1 %v2930_v11  ;;  %v3186_v27 = vor.u32 %v3785_v25, %v3185_v20  ;;  %v3749_v31 = vld [vmem:[#allocation4 + $0xcc] sm:$0xf0]  ;;  %v3187_v35 = vld [vmem:[#allocation4 + $0x1f0] sm:$0xf0]  ;;  %v3062_v43 = vor.u32 %v3751_v28, %v3059_v29 }
  0x34   : > { %v3041_v30 = vld [vmem:[#allocation4 + $0xc0] sm:$0xf]  ;;  %1164 = vmatpush.bf16.msra.mxu2 %v3058_v24  ;;  %v3781_v33 = vld [vmem:[#allocation4 + $0x1cc] sm:$0xf0]  ;;  %v3783_v34 = vld [vmem:[#allocation4 + $0x1e4] sm:$0xf]  ;;  %v2914_v41 = vor.u32 %v3715_v22, %v2911_v23 }
  0x35   : > { %v3169_v32 = vld [vmem:[#allocation4 + $0x1c0] sm:$0xf]  ;;  %1183 = vmatpush.bf16.msra.mxu3 %v3186_v27  ;;  %v3042_v36 = vor.u32 %v3749_v31, %v3041_v30  ;;  %v3745_v40 = vld [vmem:[#allocation4 + $0xac] sm:$0xf0]  ;;  %v3190_v46 = vor.u32 %v3783_v34, %v3187_v35  ;;  %v3747_v47 = vld [vmem:[#allocation4 + $0xc4] sm:$0xf] }
  0x36   : > { %v3170_v37 = vor.u32 %v3781_v33, %v3169_v32  ;;  %718 = vmatpush.bf16.msra.mxu0 %v2918_v21  ;;  %v3025_v39 = vld [vmem:[#allocation4 + $0xa0] sm:$0xf]  ;;  %v3777_v45 = vld [vmem:[#allocation4 + $0x1ac] sm:$0xf0]  ;;  %v3043_v48 = vld [vmem:[#allocation4 + $0xd0] sm:$0xf0] }
  0x37   : > { %737 = vmatpush.bf16.msra.mxu1 %v2922_v26  ;;  %v3713_v42 = vld [vmem:[%s4430_s4] sm:$0xff]  ;;  %v3026_v50 = vor.u32 %v3745_v40, %v3025_v39  ;;  %v3171_v51 = vld [vmem:[#allocation4 + $0x1d0] sm:$0xf0]  ;;  %v3741_v54 = vld [vmem:[#allocation4 + $0x8c] sm:$0xf0]  ;;  %v3046_v57 = vor.u32 %v3747_v47, %v3043_v48  ;;  %vm1784_vm1 = vcmask 130048  }
  0x38   : > { %v3153_v44 = vld [vmem:[#allocation4 + $0x1a0] sm:$0xf]  ;;  %1165 = vmatpush.bf16.msra.mxu2 %v3042_v36  ;;  %v3779_v49 = vld [vmem:[#allocation4 + $0x1c4] sm:$0xf]  ;;  %v3773_v56 = vld [vmem:[#allocation4 + $0x18c] sm:$0xf0] }
  0x39   : > { %1184 = vmatpush.bf16.msra.mxu3 %v3170_v37  ;;  %v3154_v52 = vor.u32 %v3777_v45, %v3153_v44  ;;  %v3009_v53 = vld [vmem:[#allocation4 + $0x80] sm:$0xf]  ;;  %v3743_v58 = vld [vmem:[#allocation4 + $0xa4] sm:$0xf]  ;;  %v3174_v59 = vor.u32 %v3779_v49, %v3171_v51  ;;  %v3027_v60 = vld [vmem:[#allocation4 + $0xb0] sm:$0xf0] }
  0x3a   : > { %719 = vmatpush.bf16.msra.mxu0 %v2910_v38  ;;  %v3137_v55 = vld [vmem:[#allocation4 + $0x180] sm:$0xf]  ;;  %v3010_v61 = vor.u32 %v3741_v54, %v3009_v53  ;;  %v3775_v62 = vld [vmem:[#allocation4 + $0x1a4] sm:$0xf]  ;;  %v3155_v63 = vld [vmem:[#allocation4 + $0x1b0] sm:$0xf0]  ;;  %v3030_v1 = vor.u32 %v3743_v58, %v3027_v60 }
  0x3b   : > { %738 = vmatpush.bf16.msra.mxu1 %v2914_v41  ;;  %v3138_v0 = vor.u32 %v3773_v56, %v3137_v55  ;;  %v3158_v2 = vor.u32 %v3775_v62, %v3155_v63  ;;  %v3739_v3 = vld [vmem:[#allocation4 + $0x84] sm:$0xf]  ;;  %v3011_v4 = vld [vmem:[#allocation4 + $0x90] sm:$0xf0]  ;;  %v2993_v10 = vld [vmem:[#allocation4 + $0x60] sm:$0xf] }
  0x3c   : > { %1166 = vmatpush.bf16.msra.mxu2 %v3026_v50  ;;  %v3771_v5 = vld [vmem:[#allocation4 + $0x184] sm:$0xf]  ;;  %v3139_v6 = vld [vmem:[#allocation4 + $0x190] sm:$0xf0]  ;;  %v3014_v7 = vor.u32 %v3739_v3, %v3011_v4  ;;  %v3737_v11 = vld [vmem:[#allocation4 + $0x6c] sm:$0xf0] }
  0x3d   : > { %2939 = vmatmul.msk.bf16.vlgmr.msra.gmra.mxu0 %vm705_vm0, %v3713_v42  ;;  %1185 = vmatpush.bf16.msra.mxu3 %v3154_v52  ;;  %v3142_v8 = vor.u32 %v3771_v5, %v3139_v6  ;;  %v3714_v9 = vld [vmem:[%s4430_s4 + $0x8] sm:$0xff]  ;;  %v2994_v12 = vor.u32 %v3737_v11, %v2993_v10  ;;  %v3121_v13 = vld [vmem:[#allocation4 + $0x160] sm:$0xf]  ;;  %v3769_v14 = vld [vmem:[#allocation4 + $0x16c] sm:$0xf0]  ;;  %s2896_s4 = sshll.u32 %s4736_s12, 3 }
  0x3e   : > { %1202 = vmatpush.bf16.msrb.mxu0 %v3062_v43  ;;  %2941 = vmatmul.msk.bf16.vlgmr.msra.gmra.mxu1 %vm705_vm0, %v3713_v42  ;;  %v3735_v15 = vld [vmem:[#allocation4 + $0x64] sm:$0xf]  ;;  %v3122_v16 = vor.u32 %v3769_v14, %v3121_v13  ;;  %v2995_v17 = vld [vmem:[#allocation4 + $0x70] sm:$0xf0]  ;;  %v2977_v22 = vld [vmem:[#allocation4 + $0x40] sm:$0xf]  ;;  %s628_s28 = scalar_lea.vmem %s4706_s2, %s2896_s4 }
  0x3f   : > { %1221 = vmatpush.bf16.msrb.mxu1 %v3190_v46  ;;  %v3767_v18 = vld [vmem:[#allocation4 + $0x164] sm:$0xf]  ;;  %v3123_v19 = vld [vmem:[#allocation4 + $0x170] sm:$0xf0]  ;;  %v2998_v20 = vor.u32 %v3735_v15, %v2995_v17  ;;  %v3733_v23 = vld [vmem:[#allocation4 + $0x4c] sm:$0xf0] }
  0x40   : > { %1167 = vmatpush.bf16.msra.mxu2 %v3010_v61  ;;  %v3126_v21 = vor.u32 %v3767_v18, %v3123_v19  ;;  %v3105_v24 = vld [vmem:[#allocation4 + $0x140] sm:$0xf]  ;;  %v2978_v25 = vor.u32 %v3733_v23, %v2977_v22  ;;  %v3765_v26 = vld [vmem:[#allocation4 + $0x14c] sm:$0xf0]  ;;  %v3731_v27 = vld [vmem:[#allocation4 + $0x44] sm:$0xf] }
  0x41   : > { %1186 = vmatpush.bf16.msra.mxu3 %v3138_v0  ;;  %v2979_v28 = vld [vmem:[#allocation4 + $0x50] sm:$0xf0]  ;;  %v3106_v29 = vor.u32 %v3765_v26, %v3105_v24  ;;  %v3763_v31 = vld [vmem:[#allocation4 + $0x144] sm:$0xf]  ;;  %v2961_v34 = vld [vmem:[#allocation4 + $0x20] sm:$0xf] }
  0x42   : > { %1203 = vmatpush.bf16.msrb.mxu0 %v3046_v57  ;;  %v2982_v30 = vor.u32 %v3731_v27, %v2979_v28  ;;  %v3107_v32 = vld [vmem:[#allocation4 + $0x150] sm:$0xf0]  ;;  %v3729_v35 = vld [vmem:[#allocation4 + $0x2c] sm:$0xf0]  ;;  %v3089_v36 = vld [vmem:[#allocation4 + $0x120] sm:$0xf] }
  0x43   : > { %1222 = vmatpush.bf16.msrb.mxu1 %v3174_v59  ;;  %v3110_v33 = vor.u32 %v3763_v31, %v3107_v32  ;;  %v2962_v37 = vor.u32 %v3729_v35, %v2961_v34  ;;  %v3761_v38 = vld [vmem:[#allocation4 + $0x12c] sm:$0xf0]  ;;  %v3727_v39 = vld [vmem:[#allocation4 + $0x24] sm:$0xf]  ;;  %v2963_v40 = vld [vmem:[#allocation4 + $0x30] sm:$0xf0] }
  0x44   : > { %1168 = vmatpush.bf16.msra.mxu2 %v2994_v12  ;;  %v3090_v41 = vor.u32 %v3761_v38, %v3089_v36  ;;  %v2966_v42 = vor.u32 %v3727_v39, %v2963_v40  ;;  %v3759_v43 = vld [vmem:[#allocation4 + $0x124] sm:$0xf]  ;;  %v3091_v44 = vld [vmem:[#allocation4 + $0x130] sm:$0xf0]  ;;  %v2945_v46 = vld [vmem:[#allocation4] sm:$0xf] }
  0x45   : > { %1187 = vmatpush.bf16.msra.mxu3 %v3122_v16  ;;  %v3094_v45 = vor.u32 %v3759_v43, %v3091_v44  ;;  %v3725_v47 = vld [vmem:[#allocation4 + $0xc] sm:$0xf0]  ;;  %v3073_v48 = vld [vmem:[#allocation4 + $0x100] sm:$0xf]  ;;  %v3723_v51 = vld [vmem:[#allocation4 + $0x4] sm:$0xf] }
  0x46   : > { %1204 = vmatpush.bf16.msrb.mxu0 %v3030_v1  ;;  %v2946_v49 = vor.u32 %v3725_v47, %v2945_v46  ;;  %v3757_v50 = vld [vmem:[#allocation4 + $0x10c] sm:$0xf0]  ;;  %v2947_v52 = vld [vmem:[#allocation4 + $0x10] sm:$0xf0]  ;;  %v3755_v55 = vld [vmem:[#allocation4 + $0x104] sm:$0xf] }
  0x47   : > { %1223 = vmatpush.bf16.msrb.mxu1 %v3158_v2  ;;  %v3074_v53 = vor.u32 %v3757_v50, %v3073_v48  ;;  %v2950_v54 = vor.u32 %v3723_v51, %v2947_v52  ;;  %v3075_v56 = vld [vmem:[#allocation4 + $0x110] sm:$0xf0]  ;;  %v3065_v58 = vld [vmem:[#allocation4 + $0xe8] sm:$0xf]  ;;  %v3754_v59 = vld [vmem:[#allocation4 + $0xf4] sm:$0xf0] }
  0x48   : > { %1169 = vmatpush.bf16.msra.mxu2 %v2978_v25  ;;  %v3078_v57 = vor.u32 %v3755_v55, %v3075_v56  ;;  %v3193_v60 = vld [vmem:[#allocation4 + $0x1e8] sm:$0xf]  ;;  %v3066_v61 = vor.u32 %v3754_v59, %v3065_v58  ;;  %v3786_v62 = vld [vmem:[#allocation4 + $0x1f4] sm:$0xf0]  ;;  %v3752_v63 = vld [vmem:[#allocation4 + $0xec] sm:$0xf] }
  0x49   : > { %1188 = vmatpush.bf16.msra.mxu3 %v3106_v29  ;;  %v3067_v0 = vld [vmem:[#allocation4 + $0xf8] sm:$0xf0]  ;;  %v3194_v1 = vor.u32 %v3786_v62, %v3193_v60  ;;  %v3784_v3 = vld [vmem:[#allocation4 + $0x1ec] sm:$0xf]  ;;  %v3049_v6 = vld [vmem:[#allocation4 + $0xc8] sm:$0xf] }
  0x4a   : > { %1205 = vmatpush.bf16.msrb.mxu0 %v3014_v7  ;;  %v3070_v2 = vor.u32 %v3752_v63, %v3067_v0  ;;  %v3195_v4 = vld [vmem:[#allocation4 + $0x1f8] sm:$0xf0]  ;;  %v3750_v7 = vld [vmem:[#allocation4 + $0xd4] sm:$0xf0]  ;;  %v3748_v11 = vld [vmem:[#allocation4 + $0xcc] sm:$0xf] }
  0x4b   : > { %1224 = vmatpush.bf16.msrb.mxu1 %v3142_v8  ;;  %v3198_v5 = vor.u32 %v3784_v3, %v3195_v4  ;;  %v3177_v8 = vld [vmem:[#allocation4 + $0x1c8] sm:$0xf]  ;;  %v3782_v10 = vld [vmem:[#allocation4 + $0x1d4] sm:$0xf0]  ;;  %v3051_v12 = vld [vmem:[#allocation4 + $0xd8] sm:$0xf0] }
  0x4c   : > { %1170 = vmatpush.bf16.msra.mxu2 %v2962_v37  ;;  %v3178_v13 = vor.u32 %v3782_v10, %v3177_v8  ;;  %v3054_v14 = vor.u32 %v3748_v11, %v3051_v12  ;;  %v3780_v15 = vld [vmem:[#allocation4 + $0x1cc] sm:$0xf]  ;;  %v3179_v16 = vld [vmem:[#allocation4 + $0x1d8] sm:$0xf0]  ;;  %v3033_v19 = vld [vmem:[#allocation4 + $0xa8] sm:$0xf] }
  0x4d   : > { %2940 = vmatmul.msk.bf16.gmra.mxu0 %vm705_vm0, %v3714_v9  ;;  %1189 = vmatpush.bf16.msra.mxu3 %v3090_v41  ;;  %v649_v17 = vld [vmem:[#allocation2] sm:$0x3]  ;;  %v3182_v18 = vor.u32 %v3780_v15, %v3179_v16  ;;  %v3778_v23 = vld [vmem:[#allocation4 + $0x1b4] sm:$0xf0]  ;;  %v3744_v24 = vld [vmem:[#allocation4 + $0xac] sm:$0xf] }
  0x4e   : > { %2942 = vmatmul.msk.bf16.gmra.mxu1 %vm705_vm0, %v3714_v9  ;;  %1206 = vmatpush.bf16.msrb.mxu0 %v2998_v20  ;;  %v3050_v9 = vor.u32 %v3750_v7, %v3049_v6  ;;  %v3746_v20 = vld [vmem:[#allocation4 + $0xb4] sm:$0xf0]  ;;  %v3035_v25 = vld [vmem:[#allocation4 + $0xb8] sm:$0xf0]  ;;  %v3776_v28 = vld [vmem:[#allocation4 + $0x1ac] sm:$0xf] }
  0x4f   : > { %1225 = vmatpush.bf16.msrb.mxu1 %v3126_v21  ;;  %v3161_v21 = vld [vmem:[#allocation4 + $0x1a8] sm:$0xf]  ;;  %v3034_v22 = vor.u32 %v3746_v20, %v3033_v19  ;;  %v3038_v27 = vor.u32 %v3744_v24, %v3035_v25  ;;  %v3163_v29 = vld [vmem:[#allocation4 + $0x1b8] sm:$0xf0]  ;;  %v3774_v36 = vld [vmem:[#allocation4 + $0x194] sm:$0xf0] }
  0x50   : > { %1171 = vmatpush.bf16.msra.mxu2 %v2946_v49  ;;  %v3162_v26 = vor.u32 %v3778_v23, %v3161_v21  ;;  %v3166_v31 = vor.u32 %v3776_v28, %v3163_v29  ;;  %v3017_v32 = vld [vmem:[#allocation4 + $0x88] sm:$0xf]  ;;  %v3740_v37 = vld [vmem:[#allocation4 + $0x8c] sm:$0xf]  ;;  %v3019_v38 = vld [vmem:[#allocation4 + $0x98] sm:$0xf0] }
  0x51   : > { %1190 = vmatpush.bf16.msra.mxu3 %v3074_v53  ;;  %v3145_v34 = vld [vmem:[#allocation4 + $0x188] sm:$0xf]  ;;  %v3022_v40 = vor.u32 %v3740_v37, %v3019_v38  ;;  %v3772_v41 = vld [vmem:[#allocation4 + $0x18c] sm:$0xf]  ;;  %v4440_v43 = vperm.slane %v649_v17, 1  ;;  %vm1873_vm2 = vcmask 392192  }
  0x52   : > { %1207 = vmatpush.bf16.msrb.mxu0 %v2982_v30  ;;  %v4438_v30 = vperm.slane %v649_v17, 0  ;;  %v3146_v39 = vor.u32 %v3774_v36, %v3145_v34  ;;  %v3001_v46 = vld [vmem:[#allocation4 + $0x68] sm:$0xf]  ;;  %v3738_v47 = vld [vmem:[#allocation4 + $0x74] sm:$0xf0]  ;;  %s4733_s29 = sld [smem:[#allocation19_spill]] }
  0x53   : > { %1226 = vmatpush.bf16.msrb.mxu1 %v3110_v33  ;;  %v3742_v33 = vld [vmem:[#allocation4 + $0x94] sm:$0xf0]  ;;  %v3129_v48 = vld [vmem:[#allocation4 + $0x168] sm:$0xf]  ;;  %v3002_v51 = vor.u32 %v3738_v47, %v3001_v46  ;;  %v3736_v53 = vld [vmem:[#allocation4 + $0x6c] sm:$0xf] }
  0x54   : > { %1240 = vmatpush.bf16.msrb.mxu2 %v3066_v61  ;;  %v3018_v35 = vor.u32 %v3742_v33, %v3017_v32  ;;  %v3770_v52 = vld [vmem:[#allocation4 + $0x174] sm:$0xf0]  ;;  %v3131_v58 = vld [vmem:[#allocation4 + $0x178] sm:$0xf0]  ;;  %v2985_v59 = vld [vmem:[#allocation4 + $0x48] sm:$0xf] }
  0x55   : > { %1259 = vmatpush.bf16.msrb.mxu3 %v3194_v1  ;;  %v3130_v55 = vor.u32 %v3770_v52, %v3129_v48  ;;  %v3734_v61 = vld [vmem:[#allocation4 + $0x54] sm:$0xf0]  ;;  %v3113_v62 = vld [vmem:[#allocation4 + $0x148] sm:$0xf]  ;;  %v2987_v4 = vld [vmem:[#allocation4 + $0x58] sm:$0xf0] }
  0x56   : > { %1208 = vmatpush.bf16.msrb.mxu0 %v2966_v42  ;;  %v3147_v42 = vld [vmem:[#allocation4 + $0x198] sm:$0xf0]  ;;  %v2986_v0 = vor.u32 %v3734_v61, %v2985_v59  ;;  %v3766_v1 = vld [vmem:[#allocation4 + $0x154] sm:$0xf0]  ;;  %v2969_v10 = vld [vmem:[#allocation4 + $0x28] sm:$0xf] }
  0x57   : > { %1227 = vmatpush.bf16.msrb.mxu1 %v3094_v45  ;;  %v3150_v44 = vor.u32 %v3772_v41, %v3147_v42  ;;  %v3114_v3 = vor.u32 %v3766_v1, %v3113_v62  ;;  %v3115_v6 = vld [vmem:[#allocation4 + $0x158] sm:$0xf0]  ;;  %v3730_v11 = vld [vmem:[#allocation4 + $0x34] sm:$0xf0]  ;;  %v3097_v12 = vld [vmem:[#allocation4 + $0x128] sm:$0xf] }
  0x58   : > { %1241 = vmatpush.bf16.msrb.mxu2 %v3050_v9  ;;  %v3728_v15 = vld [vmem:[#allocation4 + $0x2c] sm:$0xf]  ;;  %v2971_v16 = vld [vmem:[#allocation4 + $0x38] sm:$0xf0]  ;;  %v3758_v28 = vld [vmem:[#allocation4 + $0x114] sm:$0xf0] }
  0x59   : > { %1260 = vmatpush.bf16.msrb.mxu3 %v3178_v13  ;;  %v2970_v13 = vor.u32 %v3730_v11, %v2969_v10  ;;  %v2974_v19 = vor.u32 %v3728_v15, %v2971_v16  ;;  %v3760_v20 = vld [vmem:[#allocation4 + $0x12c] sm:$0xf]  ;;  %v3099_v21 = vld [vmem:[#allocation4 + $0x138] sm:$0xf0]  ;;  %s4734_s17 = sld [smem:[#allocation20_spill]] }
  0x5a   : > { %1209 = vmatpush.bf16.msrb.mxu0 %v2950_v54  ;;  %v3003_v54 = vld [vmem:[#allocation4 + $0x78] sm:$0xf0]  ;;  %v3102_v25 = vor.u32 %v3760_v20, %v3099_v21  ;;  %v3724_v32 = vld [vmem:[#allocation4 + $0xc] sm:$0xf] }
  0x5b   : > { %1228 = vmatpush.bf16.msrb.mxu1 %v3078_v57  ;;  %v3006_v56 = vor.u32 %v3736_v53, %v3003_v54  ;;  %v3768_v57 = vld [vmem:[#allocation4 + $0x16c] sm:$0xf]  ;;  %v2955_v33 = vld [vmem:[#allocation4 + $0x18] sm:$0xf0] }
  0x5c   : > { %1242 = vmatpush.bf16.msrb.mxu2 %v3034_v22  ;;  %v3134_v60 = vor.u32 %v3768_v57, %v3131_v58  ;;  %v2953_v22 = vld [vmem:[#allocation4 + $0x8] sm:$0xf]  ;;  %v2958_v38 = vor.u32 %v3724_v32, %v2955_v33  ;;  %v3797_v10 = vld [vmem:[%s4711_s7 + $0x50] sm:$0xff]  ;;  %v3790_v11 = vld [vmem:[%s4711_s7 + $0x18] sm:$0xff] }
  0x5d   : > { %1261 = vmatpush.bf16.msrb.mxu3 %v3162_v26  ;;  %v3726_v26 = vld [vmem:[#allocation4 + $0x14] sm:$0xf0]  ;;  %v3788_v15 = vld [vmem:[%s4711_s7 + $0x8] sm:$0xff]  ;;  %v4517_v21 = vld [vmem:[%s4710_s6] sm:$0xf] }
  0x5e   : > { %1278 = vmatpush.bf16.msra.mxu0 %v3070_v2  ;;  %v3732_v2 = vld [vmem:[#allocation4 + $0x4c] sm:$0xf]  ;;  %v3818_v16 = vld [vmem:[%s4711_s7 + $0xf8] sm:$0xff]  ;;  %v3807_v32 = vld [vmem:[%s4711_s7 + $0xa0] sm:$0xff] }
  0x5f   : > { %1297 = vmatpush.bf16.msra.mxu1 %v3198_v5  ;;  %v3764_v5 = vld [vmem:[#allocation4 + $0x14c] sm:$0xf]  ;;  %v2990_v8 = vor.u32 %v3732_v2, %v2987_v4  ;;  %s634_s25 = scalar_lea.vmem %s4734_s17, %s2896_s4 }
  0x60   : > { %1243 = vmatpush.bf16.msrb.mxu2 %v3018_v35  ;;  %v3118_v9 = vor.u32 %v3764_v5, %v3115_v6  ;;  %v2954_v35 = vor.u32 %v3726_v26, %v2953_v22  ;;  %v3793_v4 = vld [vmem:[%s4711_s7 + $0x30] sm:$0xff]  ;;  %v3800_v5 = vld [vmem:[%s4711_s7 + $0x68] sm:$0xff]  ;;  %v3799_v6 = vld [vmem:[%s4711_s7 + $0x60] sm:$0xff] }
  0x61   : > { %1262 = vmatpush.bf16.msrb.mxu3 %v3146_v39  ;;  %v3756_v39 = vld [vmem:[#allocation4 + $0x10c] sm:$0xf] }
  0x62   : > { %1279 = vmatpush.bf16.msra.mxu0 %v3054_v14  ;;  %v3762_v14 = vld [vmem:[#allocation4 + $0x134] sm:$0xf0]  ;;  %v3816_v20 = vld [vmem:[%s4711_s7 + $0xe8] sm:$0xff]  ;;  %v3809_v22 = vld [vmem:[%s4711_s7 + $0xb0] sm:$0xff] }
  0x63   : > { %1298 = vmatpush.bf16.msra.mxu1 %v3182_v18  ;;  %v3098_v18 = vor.u32 %v3762_v14, %v3097_v12  ;;  %v3796_v12 = vld [vmem:[%s4711_s7 + $0x48] sm:$0xff]  ;;  %v3795_v14 = vld [vmem:[%s4711_s7 + $0x40] sm:$0xff] }
  0x64   : > { %1244 = vmatpush.bf16.msrb.mxu2 %v3002_v51 }
  0x65   : > { %1263 = vmatpush.bf16.msrb.mxu3 %v3130_v55 }
  0x66   : > { %1280 = vmatpush.bf16.msra.mxu0 %v3038_v27  ;;  %v3081_v27 = vld [vmem:[#allocation4 + $0x108] sm:$0xf] }
  0x67   : > { %1299 = vmatpush.bf16.msra.mxu1 %v3166_v31  ;;  %v3082_v37 = vor.u32 %v3758_v28, %v3081_v27  ;;  %v3808_v27 = vld [vmem:[%s4711_s7 + $0xa8] sm:$0xff] }
  0x68   : > { %1245 = vmatpush.bf16.msrb.mxu2 %v2986_v0 }
  0x69   : > { %1264 = vmatpush.bf16.msrb.mxu3 %v3114_v3  ;;  %v3801_v3 = vld [vmem:[%s4711_s7 + $0x70] sm:$0xff] }
  0x6a   : > { %1281 = vmatpush.bf16.msra.mxu0 %v3022_v40  ;;  %v3083_v40 = vld [vmem:[#allocation4 + $0x118] sm:$0xf0] }
  0x6b   : > { %1300 = vmatpush.bf16.msra.mxu1 %v3150_v44  ;;  %v3086_v47 = vor.u32 %v3756_v39, %v3083_v40 }
  0x6c   : > { %1246 = vmatpush.bf16.msrb.mxu2 %v2970_v13  ;;  %v3789_v13 = vld [vmem:[%s4711_s7 + $0x10] sm:$0xff] }
  0x6d   : > { %1265 = vmatpush.bf16.msrb.mxu3 %v3098_v18  ;;  %v3817_v18 = vld [vmem:[%s4711_s7 + $0xf0] sm:$0xff] }
  0x6e   : > { %1282 = vmatpush.bf16.msra.mxu0 %v3006_v56 }
  0x6f   : > { %1301 = vmatpush.bf16.msra.mxu1 %v3134_v60 }
  0x70   : > { %1247 = vmatpush.bf16.msrb.mxu2 %v2954_v35 }
  0x71   : > { %1266 = vmatpush.bf16.msrb.mxu3 %v3082_v37 }
  0x72   : > { %1283 = vmatpush.bf16.msra.mxu0 %v2990_v8  ;;  %v3798_v8 = vld [vmem:[%s4711_s7 + $0x58] sm:$0xff] }
  0x73   : > { %1302 = vmatpush.bf16.msra.mxu1 %v3118_v9  ;;  %v3791_v9 = vld [vmem:[%s4711_s7 + $0x20] sm:$0xff] }
  0x76   : > { %1284 = vmatpush.bf16.msra.mxu0 %v2974_v19  ;;  %v3810_v19 = vld [vmem:[%s4711_s7 + $0xb8] sm:$0xff] }
  0x77   : > { %1303 = vmatpush.bf16.msra.mxu1 %v3102_v25 }
  0x7a   : > { %1285 = vmatpush.bf16.msra.mxu0 %v2958_v38 }
  0x7b   : > { %1304 = vmatpush.bf16.msra.mxu1 %v3086_v47 }
  0xba   : > { %v721_v45 = vpop.f32.mrf.mxu0 }
  0xbb   : > { %v4443_v49 = vadd.f32 %v721_v45, %v4438_v30  ;;  %v740_v50 = vpop.f32.mrf.mxu1 }
  0xbc   : > { %v741_v7 = vadd.f32 %v740_v50, %v4440_v43 }
  0xbd   : > { %v750_v63 = vmul.f32 0.01, %v4443_v49 }
  0xbe   : > { %v751_v29 = vmul.f32 0.01, %v741_v7 }
  0xbf   : > { %v758_v41 = vmax.f32 %v4443_v49, %v750_v63 }
  0xc0   : > { %v759_v44 = vmax.f32 %v741_v7, %v751_v29  ;;  %v3792_v7 = vld [vmem:[%s4711_s7 + $0x28] sm:$0xff]  ;;  %v3814_v29 = vld [vmem:[%s4711_s7 + $0xd8] sm:$0xff] }
  0xc2   : > { %v723_v17 = vpop.f32.mrf.mxu0 }
  0xc3   : > { %v724_v23 = vadd.f32 %v723_v17, %v4438_v30  ;;  %v742_v24 = vpop.f32.mrf.mxu1  ;;  %v3787_v17 = vld [vmem:[%s4711_s7] sm:$0xff] }
  0xc4   : > { %v743_v31 = vadd.f32 %v742_v24, %v4440_v43  ;;  %v3815_v24 = vld [vmem:[%s4711_s7 + $0xe0] sm:$0xff] }
  0xc5   : > { %v752_v34 = vmul.f32 0.01, %v724_v23 }
  0xc6   : > { %v753_v36 = vmul.f32 0.01, %v743_v31 }
  0xc7   : > { %v760_v42 = vmax.f32 %v724_v23, %v752_v34  ;;  %v837_v23 = vperm.slane %v4517_v21, 1 }
  0xc8   : > { %v761_v45 = vmax.f32 %v743_v31, %v753_v36  ;;  %v836_v31 = vperm.slane %v4517_v21, 0  ;;  %v3813_v36 = vld [vmem:[%s4711_s7 + $0xd0] sm:$0xff] }
  0xc9   : > { %v766_v46 = vpack.c.bf16 %v760_v42, %v758_v41  ;;  %v3806_v41 = vld [vmem:[%s4711_s7 + $0x98] sm:$0xff] }
  0xca   : > { %v767_v48 = vpack.c.bf16 %v761_v45, %v759_v44  ;;  %v726_v50 = vpop.f32.mrf.mxu0  ;;  %v3812_v45 = vld [vmem:[%s4711_s7 + $0xc8] sm:$0xff] }
  0xcb   : > { %v745_v51 = vpop.f32.mrf.mxu1  ;;  %1172 = vmatmul.bf16.vlgmr.msra.gmra.mxu2 %v766_v46  ;;  %1210 = vmatmul.bf16.vlgmr.msrb.gmra.mxu0 %v766_v46  ;;  %v727_v52 = vadd.f32 %v726_v50, %v4438_v30 }
  0xcc   : > { %1191 = vmatmul.bf16.vlgmr.msra.gmra.mxu3 %v767_v48  ;;  %1229 = vmatmul.bf16.vlgmr.msrb.gmra.mxu1 %v767_v48  ;;  %v746_v49 = vadd.f32 %v745_v51, %v4440_v43 }
  0xcd   : > { %v754_v54 = vmul.f32 0.01, %v727_v52  ;;  %1673 = vmatpush.bf16.msrb.mxu1 %v3818_v16  ;;  %1654 = vmatpush.bf16.msrb.mxu0 %v3810_v19 }
  0xce   : > { %v755_v57 = vmul.f32 0.01, %v746_v49 }
  0xcf   : > { %v762_v61 = vmax.f32 %v727_v52, %v754_v54  ;;  %v3811_v54 = vld [vmem:[%s4711_s7 + $0xc0] sm:$0xff] }
  0xd0   : > { %v763_v63 = vmax.f32 %v746_v49, %v755_v57 }
  0xd1   : > { %1674 = vmatpush.bf16.msrb.mxu1 %v3817_v18  ;;  %1655 = vmatpush.bf16.msrb.mxu0 %v3809_v22 }
  0xd2   : > { %v728_v53 = vpop.f32.mrf.mxu0 }
  0xd3   : > { %v729_v55 = vadd.f32 %v728_v53, %v4438_v30  ;;  %v747_v56 = vpop.f32.mrf.mxu1  ;;  %v3802_v30 = vld [vmem:[%s4711_s7 + $0x78] sm:$0xff] }
  0xd4   : > { %v748_v58 = vadd.f32 %v747_v56, %v4440_v43  ;;  %v3794_v43 = vld [vmem:[%s4711_s7 + $0x38] sm:$0xff]  ;;  %1635 = vmatpush.bf16.msra.mxu3 %v3802_v30 }
  0xd5   : > { %v756_v59 = vmul.f32 0.01, %v729_v55  ;;  %1616 = vmatpush.bf16.msra.mxu2 %v3794_v43  ;;  %1675 = vmatpush.bf16.msrb.mxu1 %v3816_v20 }
  0xd6   : > { %v757_v60 = vmul.f32 0.01, %v748_v58  ;;  %1656 = vmatpush.bf16.msrb.mxu0 %v3808_v27  ;;  %v838_v27 = vperm.slane %v4517_v21, 2 }
  0xd7   : > { %v764_v62 = vmax.f32 %v729_v55, %v756_v59 }
  0xd8   : > { %v765_v0 = vmax.f32 %v748_v58, %v757_v60  ;;  %1636 = vmatpush.bf16.msra.mxu3 %v3801_v3  ;;  %v3804_v60 = vld [vmem:[%s4711_s7 + $0x88] sm:$0xff] }
  0xd9   : > { %v768_v1 = vpack.c.bf16 %v764_v62, %v762_v61  ;;  %1617 = vmatpush.bf16.msra.mxu2 %v3793_v4  ;;  %1676 = vmatpush.bf16.msrb.mxu1 %v3815_v24 }
  0xda   : > { %v769_v2 = vpack.c.bf16 %v765_v0, %v763_v63  ;;  %1657 = vmatpush.bf16.msrb.mxu0 %v3807_v32 }
  0xdb   : > { %1177 = vmatmul.bf16.gmra.mxu2 %v768_v1  ;;  %1215 = vmatmul.bf16.gmra.mxu0 %v768_v1 }
  0xdc   : > { %1196 = vmatmul.bf16.gmra.mxu3 %v769_v2  ;;  %1234 = vmatmul.bf16.gmra.mxu1 %v769_v2 }
  0xdd   : > { %1637 = vmatpush.bf16.msra.mxu3 %v3800_v5  ;;  %1618 = vmatpush.bf16.msra.mxu2 %v3792_v7 }
  0xde   : > { %1677 = vmatpush.bf16.msrb.mxu1 %v3814_v29  ;;  %1658 = vmatpush.bf16.msrb.mxu0 %v3806_v41 }
  0xe1   : > { %1638 = vmatpush.bf16.msra.mxu3 %v3799_v6  ;;  %1619 = vmatpush.bf16.msra.mxu2 %v3791_v9 }
  0xe2   : > { %1678 = vmatpush.bf16.msrb.mxu1 %v3813_v36 }
  0xe5   : > { %1639 = vmatpush.bf16.msra.mxu3 %v3798_v8  ;;  %1620 = vmatpush.bf16.msra.mxu2 %v3790_v11 }
  0xe6   : > { %1679 = vmatpush.bf16.msrb.mxu1 %v3812_v45 }
  0xe9   : > { %1640 = vmatpush.bf16.msra.mxu3 %v3797_v10  ;;  %1621 = vmatpush.bf16.msra.mxu2 %v3789_v13 }
  0xea   : > { %1680 = vmatpush.bf16.msrb.mxu1 %v3811_v54 }
  0xeb   : > { %1248 = vmatmul.bf16.vlgmr.msrb.gmra.mxu2 %v766_v46  ;;  %1286 = vmatmul.bf16.vlgmr.msra.gmra.mxu0 %v766_v46 }
  0xec   : > { %1267 = vmatmul.bf16.vlgmr.msrb.gmra.mxu3 %v767_v48  ;;  %1305 = vmatmul.bf16.vlgmr.msra.gmra.mxu1 %v767_v48  ;;  %v3805_v48 = vld [vmem:[%s4711_s7 + $0x90] sm:$0xff] }
  0xed   : > { %1641 = vmatpush.bf16.msra.mxu3 %v3796_v12  ;;  %1622 = vmatpush.bf16.msra.mxu2 %v3788_v15 }
  0xee   : > { %1659 = vmatpush.bf16.msrb.mxu0 %v3805_v48 }
  0xf1   : > { %1642 = vmatpush.bf16.msra.mxu3 %v3795_v14  ;;  %1623 = vmatpush.bf16.msra.mxu2 %v3787_v17  ;;  %v839_v17 = vperm.slane %v4517_v21, 3 }
  0xf2   : > { %1660 = vmatpush.bf16.msrb.mxu0 %v3804_v60 }
  0xfb   : > { %1253 = vmatmul.bf16.gmra.mxu2 %v768_v1  ;;  %1291 = vmatmul.bf16.gmra.mxu0 %v768_v1  ;;  %v3803_v1 = vld [vmem:[%s4711_s7 + $0x80] sm:$0xff] }
  0xfc   : > { %1272 = vmatmul.bf16.gmra.mxu3 %v769_v2  ;;  %1310 = vmatmul.bf16.gmra.mxu1 %v769_v2 }
  0xfd   : > { %1661 = vmatpush.bf16.msrb.mxu0 %v3803_v1 }
 0x148   : > { %v1211_v25 = vpop.f32.mrf.mxu0 }
 0x149   : > { %v1230_v26 = vpop.f32.mrf.mxu1  ;;  %v1212_v28 = vadd.f32 %v1211_v25, %v837_v23 }
 0x14b   : > { %v1231_v34 = vadd.f32 %v1230_v26, %v1212_v28 }
 0x14d   : > { %v1317_v42 = vmul.f32 0.01, %v1231_v34 }
 0x14e   : > { %v1173_v33 = vpop.f32.mrf.mxu2 }
 0x14f   : > { %v1192_v35 = vpop.f32.mrf.mxu3  ;;  %v1174_v38 = vadd.f32 %v1173_v33, %v836_v31  ;;  %v1333_v51 = vmax.f32 %v1231_v34, %v1317_v42 }
 0x150   : > { %v1213_v37 = vpop.f32.mrf.mxu0 }
 0x151   : > { %v1214_v39 = vadd.f32 %v1213_v37, %v837_v23  ;;  %v1232_v40 = vpop.f32.mrf.mxu1  ;;  %v1193_v46 = vadd.f32 %v1192_v35, %v1174_v38 }
 0x153   : > { %v1233_v44 = vadd.f32 %v1232_v40, %v1214_v39  ;;  %v1316_v56 = vmul.f32 0.01, %v1193_v46 }
 0x155   : > { %v1321_v47 = vmul.f32 0.01, %v1233_v44  ;;  %v1332_v63 = vmax.f32 %v1193_v46, %v1316_v56 }
 0x156   : > { %v1175_v50 = vpop.f32.mrf.mxu2 }
 0x157   : > { %v1337_v52 = vmax.f32 %v1233_v44, %v1321_v47  ;;  %v1176_v49 = vadd.f32 %v1175_v50, %v836_v31  ;;  %v1194_v53 = vpop.f32.mrf.mxu3 }
 0x158   : > { %v1216_v55 = vpop.f32.mrf.mxu0 }
 0x159   : > { %v1349_v57 = vpack.c.bf16 %v1337_v52, %v1333_v51  ;;  %v1195_v58 = vadd.f32 %v1194_v53, %v1176_v49  ;;  %v1235_v59 = vpop.f32.mrf.mxu1  ;;  %v1217_v62 = vadd.f32 %v1216_v55, %v837_v23 }
 0x15b   : > { %v1320_v61 = vmul.f32 0.01, %v1195_v58  ;;  %1643 = vmatmul.bf16.vlgmr.msra.gmra.mxu3 %v1349_v57  ;;  %v1236_v43 = vadd.f32 %v1235_v59, %v1217_v62 }
 0x15d   : > { %v1336_v0 = vmax.f32 %v1195_v58, %v1320_v61  ;;  %v1325_v8 = vmul.f32 0.01, %v1236_v43 }
 0x15e   : > { %v1178_v2 = vpop.f32.mrf.mxu2 }
 0x15f   : > { %v1348_v30 = vpack.c.bf16 %v1336_v0, %v1332_v63  ;;  %v1197_v3 = vpop.f32.mrf.mxu3  ;;  %v1179_v5 = vadd.f32 %v1178_v2, %v836_v31  ;;  %v1341_v13 = vmax.f32 %v1236_v43, %v1325_v8 }
 0x160   : > { %v1218_v4 = vpop.f32.mrf.mxu0 }
 0x161   : > { %v1219_v6 = vadd.f32 %v1218_v4, %v837_v23  ;;  %v1237_v7 = vpop.f32.mrf.mxu1  ;;  %1624 = vmatmul.bf16.vlgmr.msra.gmra.mxu2 %v1348_v30  ;;  %v1198_v10 = vadd.f32 %v1197_v3, %v1179_v5 }
 0x163   : > { %v1238_v9 = vadd.f32 %v1237_v7, %v1219_v6  ;;  %v1324_v19 = vmul.f32 0.01, %v1198_v10 }
 0x165   : > { %v1329_v11 = vmul.f32 0.01, %v1238_v9  ;;  %v1340_v26 = vmax.f32 %v1198_v10, %v1324_v19 }
 0x166   : > { %v1180_v12 = vpop.f32.mrf.mxu2 }
 0x167   : > { %v1345_v14 = vmax.f32 %v1238_v9, %v1329_v11  ;;  %v1181_v15 = vadd.f32 %v1180_v12, %v836_v31  ;;  %v1199_v16 = vpop.f32.mrf.mxu3 }
 0x168   : > { %v1287_v18 = vpop.f32.mrf.mxu0 }
 0x169   : > { %v1200_v20 = vadd.f32 %v1199_v16, %v1181_v15  ;;  %v1306_v22 = vpop.f32.mrf.mxu1  ;;  %v1353_v24 = vpack.c.bf16 %v1345_v14, %v1341_v13  ;;  %v1288_v23 = vadd.f32 %v1287_v18, %v839_v17  ;;  %v3990_v15 = vld [vmem:[#allocation6] ss:$0 sm:$0xff] }
 0x16b   : > { %v1328_v25 = vmul.f32 0.01, %v1200_v20  ;;  %1648 = vmatmul.bf16.gmra.mxu3 %v1353_v24  ;;  %v1307_v32 = vadd.f32 %v1306_v22, %v1288_v23 }
 0x16d   : > { %v1344_v28 = vmax.f32 %v1200_v20, %v1328_v25  ;;  %v1319_v38 = vmul.f32 0.01, %v1307_v32 }
 0x16e   : > { %v1249_v29 = vpop.f32.mrf.mxu2 }
 0x16f   : > { %v1268_v33 = vpop.f32.mrf.mxu3  ;;  %v1352_v34 = vpack.c.bf16 %v1344_v28, %v1340_v26  ;;  %v1250_v35 = vadd.f32 %v1249_v29, %v838_v27  ;;  %v1335_v44 = vmax.f32 %v1307_v32, %v1319_v38 }
 0x170   : > { %v1289_v31 = vpop.f32.mrf.mxu0 }
 0x171   : > { %v1290_v36 = vadd.f32 %v1289_v31, %v839_v17  ;;  %v1308_v37 = vpop.f32.mrf.mxu1  ;;  %1629 = vmatmul.bf16.gmra.mxu2 %v1352_v34  ;;  %v1269_v40 = vadd.f32 %v1268_v33, %v1250_v35 }
 0x173   : > { %v1309_v39 = vadd.f32 %v1308_v37, %v1290_v36  ;;  %v1318_v48 = vmul.f32 0.01, %v1269_v40 }
 0x175   : > { %v1323_v41 = vmul.f32 0.01, %v1309_v39  ;;  %v1334_v54 = vmax.f32 %v1269_v40, %v1318_v48 }
 0x176   : > { %v1251_v42 = vpop.f32.mrf.mxu2 }
 0x177   : > { %v1339_v45 = vmax.f32 %v1309_v39, %v1323_v41  ;;  %v1252_v46 = vadd.f32 %v1251_v42, %v838_v27  ;;  %v1270_v47 = vpop.f32.mrf.mxu3 }
 0x178   : > { %v1292_v21 = vpop.f32.mrf.mxu0 }
 0x179   : > { %v1351_v50 = vpack.c.bf16 %v1339_v45, %v1335_v44  ;;  %v1271_v51 = vadd.f32 %v1270_v47, %v1252_v46  ;;  %v1311_v52 = vpop.f32.mrf.mxu1  ;;  %v1293_v53 = vadd.f32 %v1292_v21, %v839_v17 }
 0x17b   : > { %v1322_v49 = vmul.f32 0.01, %v1271_v51  ;;  %1681 = vmatmul.bf16.vlgmr.msrb.gmra.mxu1 %v1351_v50  ;;  %v1312_v58 = vadd.f32 %v1311_v52, %v1293_v53 }
 0x17d   : > { %v1338_v55 = vmax.f32 %v1271_v51, %v1322_v49  ;;  %v1327_v0 = vmul.f32 0.01, %v1312_v58 }
 0x17e   : > { %v1254_v56 = vpop.f32.mrf.mxu2 }
 0x17f   : > { %v1350_v57 = vpack.c.bf16 %v1338_v55, %v1334_v54  ;;  %v1273_v59 = vpop.f32.mrf.mxu3  ;;  %v1255_v61 = vadd.f32 %v1254_v56, %v838_v27  ;;  %v1343_v3 = vmax.f32 %v1312_v58, %v1327_v0  ;;  %v1693_v0 = vld [vmem:[%s628_s28 + $0x8] sm:$0xff] }
 0x180   : > { %v1294_v60 = vpop.f32.mrf.mxu0 }
 0x181   : > { %v1295_v62 = vadd.f32 %v1294_v60, %v839_v17  ;;  %1662 = vmatmul.bf16.vlgmr.msrb.gmra.mxu0 %v1350_v57  ;;  %v1313_v63 = vpop.f32.mrf.mxu1  ;;  %v1274_v2 = vadd.f32 %v1273_v59, %v1255_v61  ;;  %v1692_v61 = vld [vmem:[%s628_s28] sm:$0xff] }
 0x183   : > { %v1314_v1 = vadd.f32 %v1313_v63, %v1295_v62  ;;  %v1326_v7 = vmul.f32 0.01, %v1274_v2 }
 0x185   : > { %v1331_v30 = vmul.f32 0.01, %v1314_v1  ;;  %v1342_v11 = vmax.f32 %v1274_v2, %v1326_v7 }
 0x186   : > { %v1256_v43 = vpop.f32.mrf.mxu2 }
 0x187   : > { %v1347_v4 = vmax.f32 %v1314_v1, %v1331_v30  ;;  %v1257_v5 = vadd.f32 %v1256_v43, %v838_v27  ;;  %v1275_v6 = vpop.f32.mrf.mxu3  ;;  %v1694_v30 = vld [vmem:[%s628_s28 + $0x10] sm:$0xff] }
 0x189   : > { %v1276_v8 = vadd.f32 %v1275_v6, %v1257_v5  ;;  %v1355_v9 = vpack.c.bf16 %v1347_v4, %v1343_v3  ;;  %v1695_v4 = vld [vmem:[%s628_s28 + $0x18] sm:$0xff]  ;;  %v3819_v5 = vld [vmem:[%s622_s21] sm:$0xff] }
 0x18b   : > { %v1330_v10 = vmul.f32 0.01, %v1276_v8  ;;  %1686 = vmatmul.bf16.gmra.mxu1 %v1355_v9 }
 0x18d   : > { %v1346_v12 = vmax.f32 %v1276_v8, %v1330_v10 }
 0x18f   : > { %v1354_v13 = vpack.c.bf16 %v1346_v12, %v1342_v11 }
 0x191   : > { %1667 = vmatmul.bf16.gmra.mxu0 %v1354_v13 }
 0x1de   : > { %v1644_v16 = vpop.f32.mrf.mxu3 }
 0x1e4   : > { %v1625_v14 = vpop.f32.mrf.mxu2 }
 0x1e5   : > { %v1626_v17 = vadd.f32 %v3990_v15, %v1625_v14 }
 0x1e6   : > { %v1646_v25 = vpop.f32.mrf.mxu3 }
 0x1e7   : > { %v1645_v20 = vadd.f32 %v1644_v16, %v1626_v17  ;;  %v3820_v17 = vld [vmem:[%s622_s21 + $0x8] sm:$0xff] }
 0x1ec   : > { %v1627_v18 = vpop.f32.mrf.mxu2 }
 0x1ed   : > { %v1628_v23 = vadd.f32 %v3990_v15, %v1627_v18  ;;  %v3369_v18 = vld [vmem:[#allocation7 + $0x40] sm:$0xf] }
 0x1ee   : > { %v1649_v37 = vpop.f32.mrf.mxu3 }
 0x1ef   : > { %v1647_v32 = vadd.f32 %v1646_v25, %v1628_v23  ;;  %v3377_v25 = vld [vmem:[#allocation7 + $0x48] sm:$0xf] }
 0x1f4   : > { %v1630_v27 = vpop.f32.mrf.mxu2 }
 0x1f5   : > { %v1631_v35 = vadd.f32 %v3990_v15, %v1630_v27  ;;  %v3832_v27 = vld [vmem:[#allocation7 + $0x54] sm:$0xf0] }
 0x1f6   : > { %v1651_v50 = vpop.f32.mrf.mxu3 }
 0x1f7   : > { %v1650_v42 = vadd.f32 %v1649_v37, %v1631_v35  ;;  %v3825_v35 = vld [vmem:[#allocation7 + $0x24] sm:$0xf] }
 0x1f8   : > { %v1682_v19 = vpop.f32.mrf.mxu1 }
 0x1fc   : > { %v1632_v40 = vpop.f32.mrf.mxu2 }
 0x1fd   : > { %v1633_v47 = vadd.f32 %v3990_v15, %v1632_v40  ;;  %v3828_v40 = vld [vmem:[#allocation7 + $0x34] sm:$0xf0] }
 0x1fe   : > { %v1663_v22 = vpop.f32.mrf.mxu0 }
 0x1ff   : > { %v1664_v24 = vadd.f32 %v1663_v22, %v1645_v20  ;;  %v1652_v52 = vadd.f32 %v1651_v50, %v1633_v47  ;;  %v3829_v22 = vld [vmem:[#allocation7 + $0x44] sm:$0xf] }
 0x200   : > { %v1684_v29 = vpop.f32.mrf.mxu1  ;;  %v3821_v50 = vld [vmem:[#allocation7 + $0x4] sm:$0xf] }
 0x201   : > { %v4559_v26 = vadd.f32 %v1682_v19, %v1664_v24  ;;  %v3831_v19 = vld [vmem:[#allocation7 + $0x4c] sm:$0xf0]  ;;  %v3371_v24 = vld [vmem:[#allocation7 + $0x50] sm:$0xf0] }
 0x202   : > { %v3370_v20 = vor.u32 %v3831_v19, %v3369_v18  ;;  %v3374_v23 = vor.u32 %v3829_v22, %v3371_v24  ;;  %v3848_v18 = vld [vmem:[#allocation9 + $0x74] sm:$0xf0]  ;;  %v3513_v19 = vld [vmem:[#allocation9 + $0xf0] sm:$0xf] }
 0x203   : > { %v1696_v28 = vmul.f32 0.5, %v4559_v26 }
 0x204   : > { %1883 = vmatpush.bf16.msrb.mxu2 %v3370_v20  ;;  %1902 = vmatpush.bf16.msrb.mxu3 %v3374_v23  ;;  %v3864_v20 = vld [vmem:[#allocation9 + $0xf4] sm:$0xf0]  ;;  %v3561_v23 = vld [vmem:[#allocation9 + $0x150] sm:$0xf] }
 0x205   : > { %v1700_v33 = vmul.f32 1.442695, %v1696_v28  ;;  %v3830_v28 = vld [vmem:[#allocation7 + $0x4c] sm:$0xf] }
 0x206   : > { %v1665_v34 = vpop.f32.mrf.mxu0 }
 0x207   : > { %v1666_v31 = vadd.f32 %v1665_v34, %v1647_v32  ;;  %3992 = vpow2.f32 %v1700_v33  ;;  %v3378_v32 = vor.u32 %v3832_v27, %v3377_v25  ;;  %v3353_v34 = vld [vmem:[#allocation7 + $0x20] sm:$0xf]  ;;  %v3514_v25 = vor.u32 %v3864_v20, %v3513_v19  ;;  %v3876_v27 = vld [vmem:[#allocation9 + $0x154] sm:$0xf0] }
 0x208   : > { %v1687_v44 = vpop.f32.mrf.mxu1  ;;  %v3884_v19 = vld [vmem:[#allocation9 + $0x194] sm:$0xf0] }
 0x209   : > { %v4562_v36 = vadd.f32 %v1684_v29, %v1666_v31  ;;  %v3379_v29 = vld [vmem:[#allocation7 + $0x58] sm:$0xf0]  ;;  %v3827_v31 = vld [vmem:[#allocation7 + $0x2c] sm:$0xf0]  ;;  %1921 = vmatpush.bf16.msra.mxu0 %v3378_v32  ;;  %v3441_v32 = vld [vmem:[#allocation9 + $0x60] sm:$0xf] }
 0x20a   : > { %v3382_v33 = vor.u32 %v3830_v28, %v3379_v29  ;;  %v3354_v37 = vor.u32 %v3827_v31, %v3353_v34  ;;  %v3625_v28 = vld [vmem:[#allocation9 + $0x1d0] sm:$0xf]  ;;  %v3892_v29 = vld [vmem:[#allocation9 + $0x1d4] sm:$0xf0]  ;;  %v3505_v31 = vld [vmem:[#allocation9 + $0xe0] sm:$0xf] }
 0x20b   : > { %v1697_v38 = vmul.f32 0.5, %v4562_v36 }
 0x20c   : > { %1940 = vmatpush.bf16.msra.mxu1 %v3382_v33  ;;  %1884 = vmatpush.bf16.msrb.mxu2 %v3354_v37  ;;  %v3846_v33 = vld [vmem:[#allocation9 + $0x64] sm:$0xf0]  ;;  %v3562_v37 = vor.u32 %v3876_v27, %v3561_v23 }
 0x20d   : > { %v3993_v39 = vpop.eup %3992  ;;  %v1702_v41 = vmul.f32 1.442695, %v1697_v38  ;;  %v3355_v38 = vld [vmem:[#allocation7 + $0x30] sm:$0xf0]  ;;  %v3442_v34 = vor.u32 %v3846_v33, %v3441_v32  ;;  %v3854_v27 = vld [vmem:[#allocation9 + $0xa4] sm:$0xf0] }
 0x20e   : > { %v1668_v45 = vpop.f32.mrf.mxu0  ;;  %1712 = vrot.lane.b32.xlu0 %v3993_v39, %s4214_s27  ;;  %v3361_v39 = vld [vmem:[#allocation7 + $0x28] sm:$0xf]  ;;  %v3585_v33 = vld [vmem:[#allocation9 + $0x180] sm:$0xf] }
 0x20f   : > { %3994 = vpow2.f32 %v1702_v41  ;;  %v1669_v46 = vadd.f32 %v1668_v45, %v1650_v42  ;;  %v3358_v41 = vor.u32 %v3825_v35, %v3355_v38  ;;  %v3362_v42 = vor.u32 %v3828_v40, %v3361_v39  ;;  %v3363_v45 = vld [vmem:[#allocation7 + $0x38] sm:$0xf0]  ;;  %v3862_v35 = vld [vmem:[#allocation9 + $0xe4] sm:$0xf0]  ;;  %v3553_v40 = vld [vmem:[#allocation9 + $0x140] sm:$0xf] }
 0x210   : > { %v1689_v55 = vpop.f32.mrf.mxu1  ;;  %v3506_v38 = vor.u32 %v3862_v35, %v3505_v31  ;;  %v3626_v39 = vor.u32 %v3892_v29, %v3625_v28  ;;  %v3521_v29 = vld [vmem:[#allocation9 + $0x100] sm:$0xf]  ;;  %v3866_v32 = vld [vmem:[#allocation9 + $0x104] sm:$0xf0] }
 0x211   : > { %v4565_v21 = vadd.f32 %v1687_v44, %v1669_v46  ;;  %v3826_v44 = vld [vmem:[#allocation7 + $0x2c] sm:$0xf]  ;;  %v3337_v46 = vld [vmem:[#allocation7] sm:$0xf]  ;;  %1903 = vmatpush.bf16.msrb.mxu3 %v3358_v41  ;;  %1922 = vmatpush.bf16.msra.mxu0 %v3362_v42  ;;  %v3874_v41 = vld [vmem:[#allocation9 + $0x144] sm:$0xf0] }
 0x212   : > { %v3366_v47 = vor.u32 %v3826_v44, %v3363_v45  ;;  %v3617_v42 = vld [vmem:[#allocation9 + $0x1c0] sm:$0xf]  ;;  %v3890_v44 = vld [vmem:[#allocation9 + $0x1c4] sm:$0xf0]  ;;  %v3554_v45 = vor.u32 %v3874_v41, %v3553_v40  ;;  %v3852_v41 = vld [vmem:[#allocation9 + $0x94] sm:$0xf0] }
 0x213   : > { %v1698_v48 = vmul.f32 0.5, %v4565_v21  ;;  %v3882_v31 = vld [vmem:[#allocation9 + $0x184] sm:$0xf0] }
 0x214   : > { %1941 = vmatpush.bf16.msra.mxu1 %v3366_v47  ;;  %v3586_v35 = vor.u32 %v3882_v31, %v3585_v33 }
 0x215   : > { %v3995_v51 = vpop.eup %3994  ;;  %v1704_v49 = vmul.f32 1.442695, %v1698_v48  ;;  %v3823_v48 = vld [vmem:[#allocation7 + $0xc] sm:$0xf0] }
 0x216   : > { %v1670_v53 = vpop.f32.mrf.mxu0  ;;  %1714 = vrot.lane.b32.xlu0 %v3995_v51, %s4214_s27  ;;  %v3339_v51 = vld [vmem:[#allocation7 + $0x10] sm:$0xf0] }
 0x217   : > { %v1671_v54 = vadd.f32 %v1670_v53, %v1652_v52  ;;  %3996 = vpow2.f32 %v1704_v49  ;;  %v3338_v52 = vor.u32 %v3823_v48, %v3337_v46  ;;  %v3345_v49 = vld [vmem:[#allocation7 + $0x8] sm:$0xf]  ;;  %v3824_v53 = vld [vmem:[#allocation7 + $0x14] sm:$0xf0]  ;;  %v3618_v46 = vor.u32 %v3890_v44, %v3617_v42  ;;  %v3393_v44 = vld [vmem:[#allocation9] sm:$0xf] }
 0x219   : > { %v4568_v56 = vadd.f32 %v1689_v55, %v1671_v54  ;;  %v3822_v54 = vld [vmem:[#allocation7 + $0xc] sm:$0xf]  ;;  %v3342_v55 = vor.u32 %v3821_v50, %v3339_v51  ;;  %1885 = vmatpush.bf16.msrb.mxu2 %v3338_v52  ;;  %v3433_v51 = vld [vmem:[#allocation9 + $0x50] sm:$0xf]  ;;  %v3844_v52 = vld [vmem:[#allocation9 + $0x54] sm:$0xf0] }
 0x21b   : > { %v1699_v57 = vmul.f32 0.5, %v4568_v56  ;;  %1904 = vmatpush.bf16.msrb.mxu3 %v3342_v55 }
 0x21d   : > { %v3997_v58 = vpop.eup %3996  ;;  %v1706_v59 = vmul.f32 1.442695, %v1699_v57  ;;  %v3347_v57 = vld [vmem:[#allocation7 + $0x18] sm:$0xf0] }
 0x21e   : > { %1716 = vrot.lane.b32.xlu1 %v3997_v58, %s4214_s27  ;;  %v3346_v58 = vor.u32 %v3824_v53, %v3345_v49  ;;  %v3497_v49 = vld [vmem:[#allocation9 + $0xd0] sm:$0xf]  ;;  %v3434_v53 = vor.u32 %v3844_v52, %v3433_v51  ;;  %v1803_v51 = vld [vmem:[%s4714_s10] sm:$0xf] }
 0x21f   : > { %3998 = vpow2.f32 %v1706_v59  ;;  %v3350_v59 = vor.u32 %v3822_v54, %v3347_v57  ;;  %2403 = vmatpush.bf16.msra.mxu3 %v3514_v25  ;;  %v3860_v54 = vld [vmem:[#allocation9 + $0xd4] sm:$0xf0]  ;;  %v3545_v57 = vld [vmem:[#allocation9 + $0x130] sm:$0xf]  ;;  %v3473_v25 = vld [vmem:[#allocation9 + $0xa0] sm:$0xf] }
 0x220   : > { %1923 = vmatpush.bf16.msra.mxu0 %v3346_v58  ;;  %v3498_v55 = vor.u32 %v3860_v54, %v3497_v49  ;;  %v3872_v58 = vld [vmem:[#allocation9 + $0x134] sm:$0xf0]  ;;  %v3474_v28 = vor.u32 %v3854_v27, %v3473_v25  ;;  %v4603_v54 = vperm.slane %v1803_v51, 3 }
 0x221   : > { %1942 = vmatpush.bf16.msra.mxu1 %v3350_v59  ;;  %v3546_v59 = vor.u32 %v3872_v58, %v3545_v57 }
 0x223   : > { %2404 = vmatpush.bf16.msra.mxu3 %v3506_v38  ;;  %v3836_v38 = vld [vmem:[#allocation9 + $0x14] sm:$0xf0] }
 0x225   : > { %v3999_v60 = vpop.eup %3998 }
 0x226   : > { %1718 = vrot.lane.b32.xlu1 %v3999_v60, %s4214_s27 }
 0x227   : > { %2405 = vmatpush.bf16.msra.mxu3 %v3498_v55 }
 0x280   : > { %v1713_v62 = vpop.permute.xlu0 %1712 }
 0x281   : > { %v1724_v63 = vmul.f32 %v1713_v62, %v1692_v61 }
 0x283   : > { %1732 = vrot.lane.b32.xlu2 %v1724_v63, %s4215_s16 }
 0x288   : > { %v1715_v1 = vpop.permute.xlu0 %1714 }
 0x289   : > { %v1725_v2 = vmul.f32 %v1715_v1, %v1693_v0 }
 0x28b   : > { %1734 = vrot.lane.b32.xlu2 %v1725_v2, %s4215_s16 }
 0x290   : > { %v1717_v43 = vpop.permute.xlu1 %1716 }
 0x291   : > { %v1726_v3 = vmul.f32 %v1717_v43, %v1694_v30 }
 0x293   : > { %1736 = vrot.lane.b32.xlu0 %v1726_v3, %s4215_s16 }
 0x298   : > { %v1719_v6 = vpop.permute.xlu1 %1718 }
 0x299   : > { %v1727_v7 = vmul.f32 %v1719_v6, %v1695_v4  ;;  %v3577_v6 = vld [vmem:[#allocation9 + $0x170] sm:$0xf] }
 0x29b   : > { %1738 = vrot.lane.b32.xlu1 %v1727_v7, %s4215_s16  ;;  %1780 = vrot.lane.b32.xlu0 %v3819_v5, %s4216_s22  ;;  %v3880_v7 = vld [vmem:[#allocation9 + $0x174] sm:$0xf0] }
 0x2dd   : > { %v1733_v8 = vpop.permute.xlu2 %1732 }
 0x2de   : > { %v1744_v9 = vadd.f32 %v1733_v8, %v4559_v26  ;;  %v3641_v8 = vld [vmem:[#allocation9 + $0x1f0] sm:$0xf] }
 0x2e0   : > { %v1748_v11 = vpack.c.bf16 %v1744_v9, %v1744_v9  ;;  %v3578_v9 = vor.u32 %v3880_v7, %v3577_v6  ;;  %v3886_v7 = vld [vmem:[#allocation9 + $0x1a4] sm:$0xf0] }
 0x2e2   : > { %v1760_v14 = vunpack.c.l.b16 %v1748_v11  ;;  %v3569_v11 = vld [vmem:[#allocation9 + $0x160] sm:$0xf]  ;;  %2422 = vmatpush.bf16.msrb.mxu0 %v3578_v9  ;;  %v3417_v9 = vld [vmem:[#allocation9 + $0x30] sm:$0xf] }
 0x2e5   : > { %v1735_v10 = vpop.permute.xlu2 %1734 }
 0x2e6   : > { %v1745_v12 = vadd.f32 %v1735_v10, %v4562_v36  ;;  %v3896_v10 = vld [vmem:[#allocation9 + $0x1f4] sm:$0xf0] }
 0x2e8   : > { %v1749_v13 = vpack.c.bf16 %v1745_v12, %v1745_v12  ;;  %v3878_v12 = vld [vmem:[#allocation9 + $0x164] sm:$0xf0] }
 0x2ea   : > { %v1761_v15 = vunpack.c.l.b16 %v1749_v13  ;;  %v3642_v13 = vor.u32 %v3896_v10, %v3641_v8  ;;  %v3840_v10 = vld [vmem:[#allocation9 + $0x34] sm:$0xf0] }
 0x2ec   : > { %v1764_v16 = vpack.c.b16 %v1761_v15, %v1760_v14  ;;  %v3633_v14 = vld [vmem:[#allocation9 + $0x1e0] sm:$0xf]  ;;  %v3894_v15 = vld [vmem:[#allocation9 + $0x1e4] sm:$0xf0]  ;;  %2441 = vmatpush.bf16.msrb.mxu1 %v3642_v13  ;;  %v3856_v13 = vld [vmem:[#allocation9 + $0xb4] sm:$0xf0] }
 0x2ed   : > { %v3634_v22 = vor.u32 %v3894_v15, %v3633_v14  ;;  %v3529_v15 = vld [vmem:[#allocation9 + $0x110] sm:$0xf] }
 0x2ee   : > { %1766 = vrot.lane.b32.xlu2 %v1764_v16, %s4217_s26  ;;  %v3449_v16 = vld [vmem:[#allocation9 + $0x70] sm:$0xf] }
 0x2ef   : > { %v3450_v24 = vor.u32 %v3848_v18, %v3449_v16  ;;  %v3868_v16 = vld [vmem:[#allocation9 + $0x114] sm:$0xf0] }
 0x2f0   : > { %2442 = vmatpush.bf16.msrb.mxu1 %v3634_v22  ;;  %v3530_v18 = vor.u32 %v3868_v16, %v3529_v15  ;;  %v3409_v22 = vld [vmem:[#allocation9 + $0x20] sm:$0xf] }
 0x2f1   : > { %2384 = vmatpush.bf16.msra.mxu2 %v3450_v24  ;;  %v3838_v24 = vld [vmem:[#allocation9 + $0x24] sm:$0xf0] }
 0x2f2   : > { %v3410_v23 = vor.u32 %v3838_v24, %v3409_v22 }
 0x2f4   : > { %2443 = vmatpush.bf16.msrb.mxu1 %v3626_v39  ;;  %v3465_v39 = vld [vmem:[#allocation9 + $0x90] sm:$0xf] }
 0x2f5   : > { %2385 = vmatpush.bf16.msra.mxu2 %v3442_v34  ;;  %v3522_v34 = vor.u32 %v3866_v32, %v3521_v29  ;;  %v3466_v42 = vor.u32 %v3852_v41, %v3465_v39  ;;  %v3579_v29 = vld [vmem:[#allocation9 + $0x178] sm:$0xf0]  ;;  %v3895_v32 = vld [vmem:[#allocation9 + $0x1f4] sm:$0xf] }
 0x2f6   : > { %1782 = vrot.lane.b32.xlu2 %v3820_v17, %s4216_s22  ;;  %v3570_v17 = vor.u32 %v3878_v12, %v3569_v11  ;;  %v3418_v11 = vor.u32 %v3840_v10, %v3417_v9  ;;  %v3481_v12 = vld [vmem:[#allocation9 + $0xb0] sm:$0xf] }
 0x2f7   : > { %v3482_v14 = vor.u32 %v3856_v13, %v3481_v12 }
 0x2f8   : > { %2423 = vmatpush.bf16.msrb.mxu0 %v3570_v17  ;;  %2444 = vmatpush.bf16.msrb.mxu1 %v3618_v46  ;;  %v3593_v17 = vld [vmem:[#allocation9 + $0x190] sm:$0xf]  ;;  %v3457_v46 = vld [vmem:[#allocation9 + $0x80] sm:$0xf] }
 0x2f9   : > { %2386 = vmatpush.bf16.msra.mxu2 %v3434_v53  ;;  %v3594_v20 = vor.u32 %v3884_v19, %v3593_v17  ;;  %v4601_v53 = vperm.slane %v1803_v51, 2 }
 0x2fc   : > { %2424 = vmatpush.bf16.msrb.mxu0 %v3562_v37  ;;  %v3401_v37 = vld [vmem:[#allocation9 + $0x10] sm:$0xf] }
 0x2fd   : > { %v3402_v40 = vor.u32 %v3836_v38, %v3401_v37  ;;  %v3571_v37 = vld [vmem:[#allocation9 + $0x168] sm:$0xf0]  ;;  %v3893_v38 = vld [vmem:[#allocation9 + $0x1e4] sm:$0xf] }
 0x300   : > { %2425 = vmatpush.bf16.msrb.mxu0 %v3554_v45  ;;  %v3834_v45 = vld [vmem:[#allocation9 + $0x4] sm:$0xf0] }
 0x304   : > { %2426 = vmatpush.bf16.msrb.mxu0 %v3546_v59 }
 0x305   : > { %v1737_v60 = vpop.permute.xlu0 %1736 }
 0x306   : > { %v1746_v61 = vadd.f32 %v1737_v60, %v4565_v21  ;;  %v3609_v60 = vld [vmem:[#allocation9 + $0x1b0] sm:$0xf] }
 0x308   : > { %v1750_v63 = vpack.c.bf16 %v1746_v61, %v1746_v61  ;;  %v3888_v61 = vld [vmem:[#allocation9 + $0x1b4] sm:$0xf0] }
 0x30a   : > { %v1762_v2 = vunpack.c.l.b16 %v1750_v63  ;;  %v3425_v63 = vld [vmem:[#allocation9 + $0x40] sm:$0xf] }
 0x30d   : > { %v1739_v62 = vpop.permute.xlu1 %1738  ;;  %v1781_v3 = vpop.permute.xlu0 %1780 }
 0x30e   : > { %v1747_v0 = vadd.f32 %v1739_v62, %v4568_v56  ;;  %v3610_v62 = vor.u32 %v3888_v61, %v3609_v60  ;;  %v4607_v60 = vperm.slane %v1803_v51, 0  ;;  %v4609_v61 = vperm.slane %v1803_v51, 1  ;;  %v3563_v51 = vld [vmem:[#allocation9 + $0x158] sm:$0xf0] }
 0x310   : > { %v1751_v1 = vpack.c.bf16 %v1747_v0, %v1747_v0  ;;  %v3842_v0 = vld [vmem:[#allocation9 + $0x44] sm:$0xf0]  ;;  %2445 = vmatpush.bf16.msrb.mxu1 %v3610_v62 }
 0x312   : > { %v1763_v30 = vunpack.c.l.b16 %v1751_v1  ;;  %v3489_v1 = vld [vmem:[#allocation9 + $0xc0] sm:$0xf] }
 0x314   : > { %v1765_v43 = vpack.c.b16 %v1763_v30, %v1762_v2  ;;  %v3426_v2 = vor.u32 %v3842_v0, %v3425_v63  ;;  %v3858_v30 = vld [vmem:[#allocation9 + $0xc4] sm:$0xf0] }
 0x316   : > { %1768 = vrot.lane.b32.xlu1 %v1765_v43, %s4217_s26  ;;  %v3490_v43 = vor.u32 %v3858_v30, %v3489_v1  ;;  %2387 = vmatpush.bf16.msra.mxu2 %v3426_v2 }
 0x318   : > { %2406 = vmatpush.bf16.msra.mxu3 %v3490_v43 }
 0x31a   : > { %2388 = vmatpush.bf16.msra.mxu2 %v3418_v11 }
 0x31c   : > { %2407 = vmatpush.bf16.msra.mxu3 %v3482_v14 }
 0x31e   : > { %2389 = vmatpush.bf16.msra.mxu2 %v3410_v23 }
 0x320   : > { %2408 = vmatpush.bf16.msra.mxu3 %v3474_v28  ;;  %v3879_v28 = vld [vmem:[#allocation9 + $0x174] sm:$0xf] }
 0x321   : > { %v3582_v33 = vor.u32 %v3879_v28, %v3579_v29  ;;  %v3491_v28 = vld [vmem:[#allocation9 + $0xc8] sm:$0xf0]  ;;  %v3869_v29 = vld [vmem:[#allocation9 + $0x124] sm:$0xf] }
 0x322   : > { %2390 = vmatpush.bf16.msra.mxu2 %v3402_v40  ;;  %v3635_v40 = vld [vmem:[#allocation9 + $0x1e8] sm:$0xf0] }
 0x323   : > { %v3638_v41 = vor.u32 %v3893_v38, %v3635_v40  ;;  %v3839_v38 = vld [vmem:[#allocation9 + $0x34] sm:$0xf] }
 0x324   : > { %2409 = vmatpush.bf16.msra.mxu3 %v3466_v42  ;;  %v3847_v42 = vld [vmem:[#allocation9 + $0x74] sm:$0xf] }
 0x325   : > { %v3855_v40 = vld [vmem:[#allocation9 + $0xb4] sm:$0xf] }
 0x348   : > { %v1767_v4 = vpop.permute.xlu2 %1766 }
 0x349   : > { %v1787_v5 = vsel %vm1784_vm1, %v1767_v4, %v1781_v3  ;;  %v3537_v3 = vld [vmem:[#allocation9 + $0x120] sm:$0xf]  ;;  %v3870_v4 = vld [vmem:[#allocation9 + $0x124] sm:$0xf0] }
 0x34a   : > { %3383 = vmatmul.msk.bf16.vlgmr.msrb.gmra.mxu2 %vm1873_vm2, %v1787_v5  ;;  %3385 = vmatmul.msk.bf16.vlgmr.msrb.gmra.mxu3 %vm1873_vm2, %v1787_v5  ;;  %v3538_v6 = vor.u32 %v3870_v4, %v3537_v3 }
 0x34b   : > { %3387 = vmatmul.msk.bf16.vlgmr.msra.gmra.mxu0 %vm1873_vm2, %v1787_v5  ;;  %3389 = vmatmul.msk.bf16.vlgmr.msra.gmra.mxu1 %vm1873_vm2, %v1787_v5  ;;  %v3601_v5 = vld [vmem:[#allocation9 + $0x1a0] sm:$0xf] }
 0x34c   : > { %v3602_v8 = vor.u32 %v3886_v7, %v3601_v5  ;;  %2427 = vmatpush.bf16.msrb.mxu0 %v3538_v6 }
 0x34e   : > { %2446 = vmatpush.bf16.msrb.mxu1 %v3602_v8 }
 0x350   : > { %v1783_v47 = vpop.permute.xlu2 %1782  ;;  %2428 = vmatpush.bf16.msrb.mxu0 %v3530_v18 }
 0x352   : > { %2447 = vmatpush.bf16.msrb.mxu1 %v3594_v20 }
 0x354   : > { %2429 = vmatpush.bf16.msrb.mxu0 %v3522_v34  ;;  %v3643_v34 = vld [vmem:[#allocation9 + $0x1f8] sm:$0xf0] }
 0x355   : > { %v3646_v31 = vor.u32 %v3895_v32, %v3643_v34  ;;  %v3539_v32 = vld [vmem:[#allocation9 + $0x128] sm:$0xf0] }
 0x356   : > { %2448 = vmatpush.bf16.msrb.mxu1 %v3586_v35  ;;  %v3877_v35 = vld [vmem:[#allocation9 + $0x164] sm:$0xf]  ;;  %v3542_v34 = vor.u32 %v3869_v29, %v3539_v32 }
 0x357   : > { %v3574_v39 = vor.u32 %v3877_v35, %v3571_v37  ;;  %v3603_v35 = vld [vmem:[#allocation9 + $0x1a8] sm:$0xf0] }
 0x358   : > { %2498 = vmatpush.bf16.msra.mxu0 %v3582_v33 }
 0x35a   : > { %2517 = vmatpush.bf16.msra.mxu1 %v3646_v31  ;;  %v3885_v31 = vld [vmem:[#allocation9 + $0x1a4] sm:$0xf] }
 0x35b   : > { %v3606_v37 = vor.u32 %v3885_v31, %v3603_v35 }
 0x35c   : > { %2499 = vmatpush.bf16.msra.mxu0 %v3574_v39  ;;  %v3419_v39 = vld [vmem:[#allocation9 + $0x38] sm:$0xf0] }
 0x35e   : > { %2518 = vmatpush.bf16.msra.mxu1 %v3638_v41  ;;  %v3422_v41 = vor.u32 %v3839_v38, %v3419_v39 }
 0x388   : > { %v1769_v48 = vpop.permute.xlu1 %1768 }
 0x389   : > { %v1790_v50 = vsel %vm1784_vm1, %v1769_v48, %v1783_v47  ;;  %v3394_v47 = vor.u32 %v3834_v45, %v3393_v44  ;;  %v3850_v48 = vld [vmem:[#allocation9 + $0x84] sm:$0xf0]  ;;  %v3451_v44 = vld [vmem:[#allocation9 + $0x78] sm:$0xf0]  ;;  %v3863_v45 = vld [vmem:[#allocation9 + $0xf4] sm:$0xf] }
 0x38a   : > { %3384 = vmatmul.msk.bf16.gmra.mxu2 %vm1873_vm2, %v1790_v50  ;;  %3386 = vmatmul.msk.bf16.gmra.mxu3 %vm1873_vm2, %v1790_v50 }
 0x38b   : > { %3388 = vmatmul.msk.bf16.gmra.mxu0 %vm1873_vm2, %v1790_v50  ;;  %3390 = vmatmul.msk.bf16.gmra.mxu1 %vm1873_vm2, %v1790_v50  ;;  %v3458_v50 = vor.u32 %v3850_v48, %v3457_v46  ;;  %v3454_v46 = vor.u32 %v3847_v42, %v3451_v44  ;;  %v3483_v42 = vld [vmem:[#allocation9 + $0xb8] sm:$0xf0]  ;;  %v3867_v44 = vld [vmem:[#allocation9 + $0x114] sm:$0xf] }
 0x38c   : > { %2391 = vmatpush.bf16.msra.mxu2 %v3394_v47  ;;  %v3515_v47 = vld [vmem:[#allocation9 + $0xf8] sm:$0xf0] }
 0x38d   : > { %2410 = vmatpush.bf16.msra.mxu3 %v3458_v50  ;;  %v3518_v48 = vor.u32 %v3863_v45, %v3515_v47  ;;  %v3875_v50 = vld [vmem:[#allocation9 + $0x154] sm:$0xf]  ;;  %v3531_v45 = vld [vmem:[#allocation9 + $0x118] sm:$0xf0] }
 0x38e   : > { %v3534_v47 = vor.u32 %v3867_v44, %v3531_v45 }
 0x390   : > { %2460 = vmatpush.bf16.msrb.mxu2 %v3454_v46  ;;  %v3486_v46 = vor.u32 %v3855_v40, %v3483_v42 }
 0x391   : > { %2479 = vmatpush.bf16.msrb.mxu3 %v3518_v48  ;;  %v3883_v48 = vld [vmem:[#allocation9 + $0x194] sm:$0xf] }
 0x3c8   : > { %v1925_v52 = vpop.f32.mrf.mxu0  ;;  %v1944_v49 = vpop.f32.mrf.mxu1 }
 0x3c9   : > { %v1926_v55 = vadd.f32 %v1925_v52, %v4601_v53  ;;  %v1945_v57 = vadd.f32 %v1944_v49, %v4603_v54  ;;  %v3891_v52 = vld [vmem:[#allocation9 + $0x1d4] sm:$0xf]  ;;  %v3566_v49 = vor.u32 %v3875_v50, %v3563_v51  ;;  %v3595_v50 = vld [vmem:[#allocation9 + $0x198] sm:$0xf0]  ;;  %v3837_v51 = vld [vmem:[#allocation9 + $0x24] sm:$0xf] }
 0x3cb   : > { %v1956_v0 = vmul.f32 0.01, %v1926_v55  ;;  %v1957_v1 = vmul.f32 0.01, %v1945_v57  ;;  %2500 = vmatpush.bf16.msra.mxu0 %v3566_v49  ;;  %v3411_v49 = vld [vmem:[#allocation9 + $0x28] sm:$0xf0] }
 0x3cd   : > { %v1887_v58 = vpop.f32.mrf.mxu2  ;;  %v1906_v59 = vpop.f32.mrf.mxu3  ;;  %v1972_v6 = vmax.f32 %v1926_v55, %v1956_v0  ;;  %v1973_v7 = vmax.f32 %v1945_v57, %v1957_v1  ;;  %v3627_v55 = vld [vmem:[#allocation9 + $0x1d8] sm:$0xf0]  ;;  %v3507_v0 = vld [vmem:[#allocation9 + $0xe8] sm:$0xf0] }
 0x3ce   : > { %v1888_v43 = vadd.f32 %v1887_v58, %v4607_v60  ;;  %v1907_v3 = vadd.f32 %v1906_v59, %v4609_v61  ;;  %v3630_v57 = vor.u32 %v3891_v52, %v3627_v55  ;;  %v3845_v58 = vld [vmem:[#allocation9 + $0x64] sm:$0xf]  ;;  %v3443_v59 = vld [vmem:[#allocation9 + $0x68] sm:$0xf0]  ;;  %v3598_v52 = vor.u32 %v3883_v48, %v3595_v50 }
 0x3cf   : > { %v3853_v55 = vld [vmem:[#allocation9 + $0xa4] sm:$0xf] }
 0x3d0   : > { %v1927_v62 = vpop.f32.mrf.mxu0  ;;  %v1946_v63 = vpop.f32.mrf.mxu1  ;;  %v1954_v12 = vmul.f32 0.01, %v1888_v43  ;;  %v1955_v13 = vmul.f32 0.01, %v1907_v3  ;;  %2519 = vmatpush.bf16.msra.mxu1 %v3630_v57  ;;  %v3475_v57 = vld [vmem:[#allocation9 + $0xa8] sm:$0xf0] }
 0x3d1   : > { %v1928_v2 = vadd.f32 %v1927_v62, %v4601_v53  ;;  %v1947_v30 = vadd.f32 %v1946_v63, %v4603_v54  ;;  %v3861_v62 = vld [vmem:[#allocation9 + $0xe4] sm:$0xf]  ;;  %v3446_v63 = vor.u32 %v3845_v58, %v3443_v59  ;;  %v3414_v58 = vor.u32 %v3837_v51, %v3411_v49 }
 0x3d2   : > { %v1970_v20 = vmax.f32 %v1888_v43, %v1954_v12  ;;  %v1971_v22 = vmax.f32 %v1907_v3, %v1955_v13  ;;  %v3510_v1 = vor.u32 %v3861_v62, %v3507_v0  ;;  %v3889_v43 = vld [vmem:[#allocation9 + $0x1c4] sm:$0xf]  ;;  %v3871_v12 = vld [vmem:[#allocation9 + $0x134] sm:$0xf]  ;;  %v3547_v13 = vld [vmem:[#allocation9 + $0x138] sm:$0xf0]  ;;  %v3478_v59 = vor.u32 %v3853_v55, %v3475_v57 }
 0x3d3   : > { %v1960_v4 = vmul.f32 0.01, %v1928_v2  ;;  %v1961_v5 = vmul.f32 0.01, %v1947_v30  ;;  %2461 = vmatpush.bf16.msrb.mxu2 %v3446_v63  ;;  %v3865_v62 = vld [vmem:[#allocation9 + $0x104] sm:$0xf] }
 0x3d4   : > { %2480 = vmatpush.bf16.msrb.mxu3 %v3510_v1  ;;  %v3523_v63 = vld [vmem:[#allocation9 + $0x108] sm:$0xf0]  ;;  %v3881_v0 = vld [vmem:[#allocation9 + $0x184] sm:$0xf] }
 0x3d5   : > { %v1976_v8 = vmax.f32 %v1928_v2, %v1960_v4  ;;  %v1977_v9 = vmax.f32 %v1947_v30, %v1961_v5  ;;  %v1889_v10 = vpop.f32.mrf.mxu2  ;;  %v1908_v11 = vpop.f32.mrf.mxu3  ;;  %v3873_v2 = vld [vmem:[#allocation9 + $0x144] sm:$0xf]  ;;  %v3555_v30 = vld [vmem:[#allocation9 + $0x148] sm:$0xf0]  ;;  %v3526_v1 = vor.u32 %v3865_v62, %v3523_v63  ;;  %v3897_v63 = vld [vmem:[%s4717_s13] sm:$0xff] }
 0x3d6   : > { %v1890_v14 = vadd.f32 %v1889_v10, %v4607_v60  ;;  %v1909_v15 = vadd.f32 %v1908_v11, %v4609_v61  ;;  %v3558_v3 = vor.u32 %v3873_v2, %v3555_v30  ;;  %v3619_v4 = vld [vmem:[#allocation9 + $0x1c8] sm:$0xf0]  ;;  %v3499_v10 = vld [vmem:[#allocation9 + $0xd8] sm:$0xf0]  ;;  %v3835_v30 = vld [vmem:[#allocation9 + $0x14] sm:$0xf] }
 0x3d7   : > { %v4617_v16 = vpack.c.bf16 %v1976_v8, %v1972_v6  ;;  %v4619_v17 = vpack.c.bf16 %v1977_v9, %v1973_v7  ;;  %v3622_v5 = vor.u32 %v3889_v43, %v3619_v4  ;;  %v3843_v6 = vld [vmem:[#allocation9 + $0x54] sm:$0xf]  ;;  %v3435_v7 = vld [vmem:[#allocation9 + $0x58] sm:$0xf0]  ;;  %v3587_v2 = vld [vmem:[#allocation9 + $0x188] sm:$0xf0] }
 0x3d8   : > { %v1958_v18 = vmul.f32 0.01, %v1890_v14  ;;  %v1959_v19 = vmul.f32 0.01, %v1909_v15  ;;  %v3859_v8 = vld [vmem:[#allocation9 + $0xd4] sm:$0xf]  ;;  %2501 = vmatpush.bf16.msra.mxu0 %v3558_v3  ;;  %v3438_v9 = vor.u32 %v3843_v6, %v3435_v7  ;;  %v3590_v3 = vor.u32 %v3881_v0, %v3587_v2 }
 0x3d9   : > { %2430 = vmatmul.bf16.vlgmr.msrb.gmra.mxu0 %v4617_v16  ;;  %2449 = vmatmul.bf16.vlgmr.msrb.gmra.mxu1 %v4619_v17  ;;  %v3502_v11 = vor.u32 %v3859_v8, %v3499_v10  ;;  %v3403_v43 = vld [vmem:[#allocation9 + $0x18] sm:$0xf0]  ;;  %v3851_v4 = vld [vmem:[#allocation9 + $0x94] sm:$0xf]  ;;  %v3833_v10 = vld [vmem:[#allocation9 + $0x4] sm:$0xf] }
 0x3da   : > { %v1974_v24 = vmax.f32 %v1890_v14, %v1958_v18  ;;  %v1975_v25 = vmax.f32 %v1909_v15, %v1959_v19  ;;  %2520 = vmatpush.bf16.msra.mxu1 %v3622_v5  ;;  %v3887_v14 = vld [vmem:[#allocation9 + $0x1b4] sm:$0xf]  ;;  %2462 = vmatpush.bf16.msrb.mxu2 %v3438_v9  ;;  %v3550_v15 = vor.u32 %v3871_v12, %v3547_v13  ;;  %v3611_v18 = vld [vmem:[#allocation9 + $0x1b8] sm:$0xf0]  ;;  %v3849_v12 = vld [vmem:[#allocation9 + $0x84] sm:$0xf] }
 0x3db   : > { %2481 = vmatpush.bf16.msrb.mxu3 %v3502_v11  ;;  %v3614_v19 = vor.u32 %v3887_v14, %v3611_v18  ;;  %v3467_v5 = vld [vmem:[#allocation9 + $0x98] sm:$0xf0]  ;;  %v3406_v6 = vor.u32 %v3835_v30, %v3403_v43  ;;  %v3395_v11 = vld [vmem:[#allocation9 + $0x8] sm:$0xf0]  ;;  %v3898_v62 = vld [vmem:[%s4717_s13 + $0x8] sm:$0xff] }
 0x3dc   : > { %v4623_v23 = vpack.c.bf16 %v1974_v24, %v1970_v20  ;;  %v4625_v27 = vpack.c.bf16 %v1975_v25, %v1971_v22  ;;  %v3841_v20 = vld [vmem:[#allocation9 + $0x44] sm:$0xf]  ;;  %v3427_v22 = vld [vmem:[#allocation9 + $0x48] sm:$0xf0]  ;;  %2502 = vmatpush.bf16.msra.mxu0 %v3550_v15  ;;  %v3470_v7 = vor.u32 %v3851_v4, %v3467_v5  ;;  %v3398_v13 = vor.u32 %v3833_v10, %v3395_v11  ;;  %v2058_v0 = vld [vmem:[%s4733_s29] sm:$0x3] }
 0x3dd   : > { %v3857_v24 = vld [vmem:[#allocation9 + $0xc4] sm:$0xf]  ;;  %v3430_v25 = vor.u32 %v3841_v20, %v3427_v22  ;;  %v3459_v14 = vld [vmem:[#allocation9 + $0x88] sm:$0xf0] }
 0x3de   : > { %2392 = vmatmul.bf16.vlgmr.msra.gmra.mxu2 %v4623_v23  ;;  %2411 = vmatmul.bf16.vlgmr.msra.gmra.mxu3 %v4625_v27  ;;  %v3494_v33 = vor.u32 %v3857_v24, %v3491_v28  ;;  %v3462_v15 = vor.u32 %v3849_v12, %v3459_v14 }
 0x3df   : > { %2521 = vmatpush.bf16.msra.mxu1 %v3614_v19  ;;  %2463 = vmatpush.bf16.msrb.mxu2 %v3430_v25 }
 0x3e0   : > { %2482 = vmatpush.bf16.msrb.mxu3 %v3494_v33  ;;  %2503 = vmatpush.bf16.msra.mxu0 %v3542_v34 }
 0x3e3   : > { %2522 = vmatpush.bf16.msra.mxu1 %v3606_v37  ;;  %2464 = vmatpush.bf16.msrb.mxu2 %v3422_v41 }
 0x3e4   : > { %2483 = vmatpush.bf16.msrb.mxu3 %v3486_v46  ;;  %2504 = vmatpush.bf16.msra.mxu0 %v3534_v47 }
 0x3e7   : > { %2523 = vmatpush.bf16.msra.mxu1 %v3598_v52  ;;  %2465 = vmatpush.bf16.msrb.mxu2 %v3414_v58 }
 0x3e8   : > { %2484 = vmatpush.bf16.msrb.mxu3 %v3478_v59  ;;  %2505 = vmatpush.bf16.msra.mxu0 %v3526_v1  ;;  %v2060_v1 = vperm.slane %v2058_v0, 0 }
 0x3eb   : > { %2524 = vmatpush.bf16.msra.mxu1 %v3590_v3  ;;  %2466 = vmatpush.bf16.msrb.mxu2 %v3406_v6 }
 0x3ec   : > { %2485 = vmatpush.bf16.msrb.mxu3 %v3470_v7 }
 0x3ef   : > { %2467 = vmatpush.bf16.msrb.mxu2 %v3398_v13 }
 0x3f0   : > { %2486 = vmatpush.bf16.msrb.mxu3 %v3462_v15 }
 0x408   : > { %v1930_v8 = vpop.f32.mrf.mxu0  ;;  %v1949_v9 = vpop.f32.mrf.mxu1 }
 0x409   : > { %v1931_v18 = vadd.f32 %v1930_v8, %v4601_v53  ;;  %v1950_v19 = vadd.f32 %v1949_v9, %v4603_v54 }
 0x40b   : > { %v1964_v28 = vmul.f32 0.01, %v1931_v18  ;;  %v1965_v29 = vmul.f32 0.01, %v1950_v19 }
 0x40d   : > { %v1892_v20 = vpop.f32.mrf.mxu2  ;;  %v1911_v22 = vpop.f32.mrf.mxu3  ;;  %v1980_v38 = vmax.f32 %v1931_v18, %v1964_v28  ;;  %v1981_v39 = vmax.f32 %v1950_v19, %v1965_v29  ;;  %v3911_v28 = vld [vmem:[%s4717_s13 + $0x70] sm:$0xff]  ;;  %v3910_v29 = vld [vmem:[%s4717_s13 + $0x68] sm:$0xff] }
 0x40e   : > { %v1893_v34 = vadd.f32 %v1892_v20, %v4607_v60  ;;  %v1912_v31 = vadd.f32 %v1911_v22, %v4609_v61 }
 0x410   : > { %v1932_v24 = vpop.f32.mrf.mxu0  ;;  %v1951_v25 = vpop.f32.mrf.mxu1  ;;  %v1962_v45 = vmul.f32 0.01, %v1893_v34  ;;  %v1963_v46 = vmul.f32 0.01, %v1912_v31 }
 0x411   : > { %v1933_v32 = vadd.f32 %v1932_v24, %v4601_v53  ;;  %v1952_v33 = vadd.f32 %v1951_v25, %v4603_v54  ;;  %v3912_v25 = vld [vmem:[%s4717_s13 + $0x78] sm:$0xff] }
 0x412   : > { %v1978_v52 = vmax.f32 %v1893_v34, %v1962_v45  ;;  %v1979_v49 = vmax.f32 %v1912_v31, %v1963_v46  ;;  %2707 = vmatpush.bf16.msra.mxu3 %v3912_v25 }
 0x413   : > { %v1968_v35 = vmul.f32 0.01, %v1933_v32  ;;  %v1969_v37 = vmul.f32 0.01, %v1952_v33 }
 0x415   : > { %v1984_v40 = vmax.f32 %v1933_v32, %v1968_v35  ;;  %v1985_v41 = vmax.f32 %v1952_v33, %v1969_v37  ;;  %v1894_v42 = vpop.f32.mrf.mxu2  ;;  %v1913_v44 = vpop.f32.mrf.mxu3  ;;  %v3909_v32 = vld [vmem:[%s4717_s13 + $0x60] sm:$0xff]  ;;  %v3908_v33 = vld [vmem:[%s4717_s13 + $0x58] sm:$0xff]  ;;  %v3907_v35 = vld [vmem:[%s4717_s13 + $0x50] sm:$0xff] }
 0x416   : > { %v1895_v47 = vadd.f32 %v1894_v42, %v4607_v60  ;;  %v1914_v53 = vadd.f32 %v1913_v44, %v4609_v61  ;;  %v3904_v60 = vld [vmem:[%s4717_s13 + $0x38] sm:$0xff]  ;;  %v3903_v61 = vld [vmem:[%s4717_s13 + $0x30] sm:$0xff]  ;;  %2708 = vmatpush.bf16.msra.mxu3 %v3911_v28  ;;  %v3906_v37 = vld [vmem:[%s4717_s13 + $0x48] sm:$0xff] }
 0x417   : > { %v1992_v48 = vpack.c.bf16 %v1984_v40, %v1980_v38  ;;  %v1993_v54 = vpack.c.bf16 %v1985_v41, %v1981_v39  ;;  %2688 = vmatpush.bf16.msra.mxu2 %v3904_v60  ;;  %v3905_v44 = vld [vmem:[%s4717_s13 + $0x40] sm:$0xff] }
 0x418   : > { %v1966_v50 = vmul.f32 0.01, %v1895_v47  ;;  %v1967_v51 = vmul.f32 0.01, %v1914_v53 }
 0x419   : > { %2435 = vmatmul.bf16.gmra.mxu0 %v1992_v48  ;;  %2454 = vmatmul.bf16.gmra.mxu1 %v1993_v54 }
 0x41a   : > { %v1982_v55 = vmax.f32 %v1895_v47, %v1966_v50  ;;  %v1983_v57 = vmax.f32 %v1914_v53, %v1967_v51  ;;  %2709 = vmatpush.bf16.msra.mxu3 %v3910_v29 }
 0x41b   : > { %2689 = vmatpush.bf16.msra.mxu2 %v3903_v61 }
 0x41c   : > { %v1990_v58 = vpack.c.bf16 %v1982_v55, %v1978_v52  ;;  %v1991_v59 = vpack.c.bf16 %v1983_v57, %v1979_v49  ;;  %v2061_v49 = vperm.slane %v2058_v0, 1 }
 0x41e   : > { %2397 = vmatmul.bf16.gmra.mxu2 %v1990_v58  ;;  %2416 = vmatmul.bf16.gmra.mxu3 %v1991_v59 }
 0x41f   : > { %2710 = vmatpush.bf16.msra.mxu3 %v3909_v32 }
 0x423   : > { %2711 = vmatpush.bf16.msra.mxu3 %v3908_v33 }
 0x427   : > { %2712 = vmatpush.bf16.msra.mxu3 %v3907_v35 }
 0x429   : > { %2506 = vmatmul.bf16.vlgmr.msra.gmra.mxu0 %v4617_v16  ;;  %2525 = vmatmul.bf16.vlgmr.msra.gmra.mxu1 %v4619_v17  ;;  %v3902_v16 = vld [vmem:[%s4717_s13 + $0x28] sm:$0xff]  ;;  %v3901_v17 = vld [vmem:[%s4717_s13 + $0x20] sm:$0xff] }
 0x42a   : > { %2690 = vmatpush.bf16.msra.mxu2 %v3902_v16 }
 0x42b   : > { %2713 = vmatpush.bf16.msra.mxu3 %v3906_v37 }
 0x42e   : > { %2468 = vmatmul.bf16.vlgmr.msrb.gmra.mxu2 %v4623_v23  ;;  %2487 = vmatmul.bf16.vlgmr.msrb.gmra.mxu3 %v4625_v27  ;;  %v3900_v23 = vld [vmem:[%s4717_s13 + $0x18] sm:$0xff]  ;;  %v3899_v27 = vld [vmem:[%s4717_s13 + $0x10] sm:$0xff] }
 0x42f   : > { %2691 = vmatpush.bf16.msra.mxu2 %v3901_v17  ;;  %2714 = vmatpush.bf16.msra.mxu3 %v3905_v44 }
 0x433   : > { %2692 = vmatpush.bf16.msra.mxu2 %v3900_v23 }
 0x437   : > { %2693 = vmatpush.bf16.msra.mxu2 %v3899_v27 }
 0x439   : > { %2511 = vmatmul.bf16.gmra.mxu0 %v1992_v48  ;;  %2530 = vmatmul.bf16.gmra.mxu1 %v1993_v54 }
 0x43b   : > { %2694 = vmatpush.bf16.msra.mxu2 %v3898_v62 }
 0x43e   : > { %2473 = vmatmul.bf16.gmra.mxu2 %v1990_v58  ;;  %2492 = vmatmul.bf16.gmra.mxu3 %v1991_v59 }
 0x43f   : > { %2695 = vmatpush.bf16.msra.mxu2 %v3897_v63 }
 0x456   : > { %v2431_v3 = vpop.f32.mrf.mxu0  ;;  %v2450_v5 = vpop.f32.mrf.mxu1 }
 0x45e   : > { %v2433_v12 = vpop.f32.mrf.mxu0  ;;  %v2452_v14 = vpop.f32.mrf.mxu1 }
 0x461   : > { %v2393_v2 = vpop.f32.mrf.mxu2  ;;  %v2412_v30 = vpop.f32.mrf.mxu3 }
 0x462   : > { %v2394_v43 = vadd.f32 %v2393_v2, %v2060_v1 }
 0x464   : > { %v2413_v4 = vadd.f32 %v2412_v30, %v2394_v43 }
 0x466   : > { %v2432_v6 = vadd.f32 %v2431_v3, %v2413_v4 }
 0x468   : > { %v2451_v10 = vadd.f32 %v2450_v5, %v2432_v6 }
 0x469   : > { %v2395_v7 = vpop.f32.mrf.mxu2  ;;  %v2414_v9 = vpop.f32.mrf.mxu3 }
 0x46a   : > { %v2396_v8 = vadd.f32 %v2395_v7, %v2060_v1  ;;  %v2536_v15 = vmul.f32 0.01, %v2451_v10 }
 0x46c   : > { %v2415_v11 = vadd.f32 %v2414_v9, %v2396_v8  ;;  %v2544_v20 = vmax.f32 %v2451_v10, %v2536_v15 }
 0x46e   : > { %v2434_v13 = vadd.f32 %v2433_v12, %v2415_v11 }
 0x470   : > { %v2453_v18 = vadd.f32 %v2452_v14, %v2434_v13 }
 0x472   : > { %v2538_v19 = vmul.f32 0.01, %v2453_v18 }
 0x474   : > { %v2546_v22 = vmax.f32 %v2453_v18, %v2538_v19 }
 0x476   : > { %v2552_v24 = vpack.c.bf16 %v2546_v22, %v2544_v20 }
 0x478   : > { %2696 = vmatmul.bf16.vlgmr.msra.gmra.mxu2 %v2552_v24 }
 0x496   : > { %v2436_v34 = vpop.f32.mrf.mxu0  ;;  %v2455_v31 = vpop.f32.mrf.mxu1 }
 0x49e   : > { %v2438_v41 = vpop.f32.mrf.mxu0  ;;  %v2457_v45 = vpop.f32.mrf.mxu1 }
 0x4a1   : > { %v2398_v38 = vpop.f32.mrf.mxu2  ;;  %v2417_v39 = vpop.f32.mrf.mxu3 }
 0x4a2   : > { %v2399_v40 = vadd.f32 %v2398_v38, %v2060_v1 }
 0x4a4   : > { %v2418_v42 = vadd.f32 %v2417_v39, %v2399_v40 }
 0x4a6   : > { %v2437_v46 = vadd.f32 %v2436_v34, %v2418_v42  ;;  %v2507_v51 = vpop.f32.mrf.mxu0  ;;  %v2526_v57 = vpop.f32.mrf.mxu1  ;;  %v3991_v42 = vld [vmem:[#allocation10] ss:$0 sm:$0xff] }
 0x4a8   : > { %v2456_v54 = vadd.f32 %v2455_v31, %v2437_v46 }
 0x4a9   : > { %v2400_v47 = vpop.f32.mrf.mxu2  ;;  %v2419_v53 = vpop.f32.mrf.mxu3 }
 0x4aa   : > { %v2401_v48 = vadd.f32 %v2400_v47, %v2060_v1  ;;  %v2540_v55 = vmul.f32 0.01, %v2456_v54 }
 0x4ac   : > { %v2420_v50 = vadd.f32 %v2419_v53, %v2401_v48  ;;  %v2548_v23 = vmax.f32 %v2456_v54, %v2540_v55 }
 0x4ae   : > { %v2439_v52 = vadd.f32 %v2438_v41, %v2420_v50  ;;  %v2509_v63 = vpop.f32.mrf.mxu0  ;;  %v2528_v3 = vpop.f32.mrf.mxu1 }
 0x4b0   : > { %v2458_v58 = vadd.f32 %v2457_v45, %v2439_v52 }
 0x4b1   : > { %v2469_v59 = vpop.f32.mrf.mxu2  ;;  %v2488_v60 = vpop.f32.mrf.mxu3 }
 0x4b2   : > { %v2542_v61 = vmul.f32 0.01, %v2458_v58  ;;  %v2470_v16 = vadd.f32 %v2469_v59, %v2061_v49 }
 0x4b4   : > { %v2489_v17 = vadd.f32 %v2488_v60, %v2470_v16  ;;  %v2550_v27 = vmax.f32 %v2458_v58, %v2542_v61 }
 0x4b6   : > { %v2554_v62 = vpack.c.bf16 %v2550_v27, %v2548_v23  ;;  %v2508_v2 = vadd.f32 %v2507_v51, %v2489_v17  ;;  %v2512_v12 = vpop.f32.mrf.mxu0  ;;  %v2531_v18 = vpop.f32.mrf.mxu1 }
 0x4b8   : > { %2701 = vmatmul.bf16.gmra.mxu2 %v2554_v62  ;;  %v2527_v4 = vadd.f32 %v2526_v57, %v2508_v2 }
 0x4b9   : > { %v2471_v1 = vpop.f32.mrf.mxu2  ;;  %v2490_v30 = vpop.f32.mrf.mxu3 }
 0x4ba   : > { %v2472_v43 = vadd.f32 %v2471_v1, %v2061_v49  ;;  %v2537_v6 = vmul.f32 0.01, %v2527_v4 }
 0x4bc   : > { %v2491_v0 = vadd.f32 %v2490_v30, %v2472_v43  ;;  %v2545_v13 = vmax.f32 %v2527_v4, %v2537_v6 }
 0x4be   : > { %v2510_v5 = vadd.f32 %v2509_v63, %v2491_v0  ;;  %v2514_v32 = vpop.f32.mrf.mxu0  ;;  %v2533_v34 = vpop.f32.mrf.mxu1 }
 0x4c0   : > { %v2529_v7 = vadd.f32 %v2528_v3, %v2510_v5 }
 0x4c1   : > { %v2474_v8 = vpop.f32.mrf.mxu2  ;;  %v2493_v9 = vpop.f32.mrf.mxu3 }
 0x4c2   : > { %v2539_v10 = vmul.f32 0.01, %v2529_v7  ;;  %v2475_v11 = vadd.f32 %v2474_v8, %v2061_v49 }
 0x4c4   : > { %v2547_v14 = vmax.f32 %v2529_v7, %v2539_v10  ;;  %v2494_v15 = vadd.f32 %v2493_v9, %v2475_v11 }
 0x4c6   : > { %v2553_v19 = vpack.c.bf16 %v2547_v14, %v2545_v13  ;;  %v2513_v20 = vadd.f32 %v2512_v12, %v2494_v15 }
 0x4c8   : > { %2715 = vmatmul.bf16.vlgmr.msra.gmra.mxu3 %v2553_v19  ;;  %v2532_v28 = vadd.f32 %v2531_v18, %v2513_v20 }
 0x4c9   : > { %v2476_v22 = vpop.f32.mrf.mxu2  ;;  %v2495_v25 = vpop.f32.mrf.mxu3 }
 0x4ca   : > { %v2477_v24 = vadd.f32 %v2476_v22, %v2061_v49  ;;  %v2541_v31 = vmul.f32 0.01, %v2532_v28 }
 0x4cc   : > { %v2496_v29 = vadd.f32 %v2495_v25, %v2477_v24  ;;  %v2549_v38 = vmax.f32 %v2532_v28, %v2541_v31 }
 0x4ce   : > { %v2515_v33 = vadd.f32 %v2514_v32, %v2496_v29 }
 0x4d0   : > { %v2534_v35 = vadd.f32 %v2533_v34, %v2515_v33 }
 0x4d2   : > { %v2543_v37 = vmul.f32 0.01, %v2534_v35 }
 0x4d4   : > { %v2551_v39 = vmax.f32 %v2534_v35, %v2543_v37 }
 0x4d6   : > { %v2555_v40 = vpack.c.bf16 %v2551_v39, %v2549_v38 }
 0x4d8   : > { %2720 = vmatmul.bf16.gmra.mxu3 %v2555_v40 }
 0x4fb   : > { %v2697_v41 = vpop.f32.mrf.mxu2 }
 0x4fc   : > { %v2698_v44 = vadd.f32 %v3991_v42, %v2697_v41 }
 0x503   : > { %v2699_v47 = vpop.f32.mrf.mxu2 }
 0x504   : > { %v2700_v48 = vadd.f32 %v3991_v42, %v2699_v47 }
 0x53b   : > { %v2702_v51 = vpop.f32.mrf.mxu2 }
 0x53c   : > { %v2703_v49 = vadd.f32 %v3991_v42, %v2702_v51 }
 0x543   : > { %v2704_v59 = vpop.f32.mrf.mxu2 }
 0x544   : > { %v2705_v60 = vadd.f32 %v3991_v42, %v2704_v59 }
 0x54b   : > { %v2716_v45 = vpop.f32.mrf.mxu3 }
 0x54c   : > { %v2717_v46 = vadd.f32 %v2716_v45, %v2698_v44 }
 0x54e   : > { %v2726_v53 = vadd.f32 %v2717_v46, %v4559_v26 }
 0x550   : > { %2730 = vst [vmem:[%s634_s25] sm:$0xff] %v2726_v53 }
 0x553   : > { %v2718_v54 = vpop.f32.mrf.mxu3 }
 0x554   : > { %v2719_v50 = vadd.f32 %v2718_v54, %v2700_v48 }
 0x556   : > { %v2727_v52 = vadd.f32 %v2719_v50, %v4562_v36 }
 0x558   : > { %2731 = vst [vmem:[%s634_s25 + $0x8] sm:$0xff] %v2727_v52 }
 0x55b   : > { %v2721_v55 = vpop.f32.mrf.mxu3 }
 0x55c   : > { %v2722_v57 = vadd.f32 %v2721_v55, %v2703_v49 }
 0x55e   : > { %v2728_v58 = vadd.f32 %v2722_v57, %v4565_v21 }
 0x560   : > { %2732 = vst [vmem:[%s634_s25 + $0x10] sm:$0xff] %v2728_v58 }
 0x563   : > { %v2723_v61 = vpop.f32.mrf.mxu3 }
 0x564   : > { %v2724_v16 = vadd.f32 %v2723_v61, %v2705_v60 }
 0x566   : > { %v2729_v26 = vadd.f32 %v2724_v16, %v4568_v56 }
 0x568   : > { %2733 = vst [vmem:[%s634_s25 + $0x18] sm:$0xff] %v2729_v26 }
 0x569 PF: > { %s29_s18 = sadd.s32 1, %s4202_s18  }
 0x56a   : > { %p26_p7 = scmp.ge.s32.totalorder %s29_s18, 4  }
 0x56c   :  { %28 = sbr.rel (!%p26_p7) target bundleno = 10 (0xa), region = 141 }
 0x571   :  { %2756 = vsyncpa [#allocation3], 1 }
 0x572   :  { %2758 = vsyncpa [#allocation3 + $0x1], 1 }
 0x573   :  { %2759 = vsyncpa [#allocation5], 1 }
 0x574   :  { %2760 = vsyncpa [#allocation8], 1 }
 0x575   :  { %2761 = vsyncpa [#allocation11], 1 }

</bundles_post_ra>
